<compile_context>
chip_gen: v7x
topology: tpu7x:2x2x1
jax: 0.10.0
libtpu: 0.0.40
codegen_flags: <defaults>
</compile_context>

<pallas_src>
import functools

import jax
import jax.numpy as jnp
from jax.experimental import pallas as pl
from jax.experimental.pallas import tpu as pltpu


# ----------------------------- Fused kernel -----------------------------------
def _fused_kernel(tokens_ref, tagproj_ref, vocabz_ref,
                  lstm_wih_ref, lstm_whh_ref, lstm_b_ref,
                  rnn_wih_ref, rnn_whh_ref, rnn_b_ref,
                  instr_ref, enc_ref, *, B, L, N):
    f32 = jnp.float32

    # ---------------- Tagger (all B*L tokens at once) ----------------
    tokens = tokens_ref[...]                                               # (B*L, E)
    logits = jnp.dot(tokens, tagproj_ref[...], preferred_element_type=f32)  # (B*L, V+1)
    logits = logits - jnp.max(logits, axis=-1, keepdims=True)
    ex = jnp.exp(logits)
    sim = ex / jnp.sum(ex, axis=-1, keepdims=True)                          # softmax over V+1
    # vocabz has a zero row appended, so sim @ vocabz == sim[:, :-1] @ vocab
    tagged = sim[:, -1:] * tokens + jnp.dot(sim, vocabz_ref[...],
                                            preferred_element_type=f32)     # (B*L, E)

    H = lstm_whh_ref.shape[-1]

    # ---------------- LSTM encoder (hoisted per-gate input projections) ----------------
    # x-projection + (bih+bhh) for ALL timesteps / all gates, hoisted out of the recurrence.
    xproj = [jnp.dot(tagged, lstm_wih_ref[k], preferred_element_type=f32) + lstm_b_ref[k]
             for k in range(4)]                                             # 4 x (B*L, H)
    whh = [lstm_whh_ref[k] for k in range(4)]                               # 4 x (H, H)

    h = jnp.zeros((B, H), f32)
    c = jnp.zeros((B, H), f32)
    for t in range(L):                                                      # fully unrolled
        pre = []
        for k in range(4):
            # rows {b*L + t} of the hoisted projection -> (B, H) for this timestep
            x_t = jnp.concatenate(
                [xproj[k][b * L + t: b * L + t + 1, :] for b in range(B)], axis=0)
            pre.append(x_t + jnp.dot(h, whh[k], preferred_element_type=f32))
        i_g = jax.nn.sigmoid(pre[0])
        f_g = jax.nn.sigmoid(pre[1])
        g_g = jnp.tanh(pre[2])
        o_g = jax.nn.sigmoid(pre[3])
        c = f_g * c + i_g * g_g
        h = o_g * jnp.tanh(c)
    enc_ref[...] = h                                                        # (B, H)

    # ---------------- ReLU-RNN decoder (same input every step, projection hoisted) --------
    x_dec = jnp.dot(h, rnn_wih_ref[...], preferred_element_type=f32) + rnn_b_ref[...]  # (B, E)
    whh_d = rnn_whh_ref[...]
    hd = jnp.zeros_like(x_dec)
    h_list = []
    for _ in range(N):                                                      # fully unrolled
        hd = jnp.maximum(x_dec + jnp.dot(hd, whh_d, preferred_element_type=f32), 0.0)
        h_list.append(hd)

    # ---------------- Attention + instruction mix (per batch, 2-D MXU ops) ----------------
    for b in range(B):
        tg_b = tagged[b * L:(b + 1) * L, :]                                 # (L, E)
        hid_b = jnp.concatenate([hn[b:b + 1, :] for hn in h_list], axis=0)  # (N, E)
        att = jnp.dot(hid_b, tg_b.T, preferred_element_type=f32)            # (N, L)
        att = att - jnp.max(att, axis=-1, keepdims=True)
        ea = jnp.exp(att)
        attn = ea / jnp.sum(ea, axis=-1, keepdims=True)                     # softmax over L
        instr_ref[b] = jnp.dot(attn, tg_b, preferred_element_type=f32)      # (N, E)


# ----------------------------- Model wrapper ----------------------------------
def instructions_model_forward(vocab, tokens_pad, params, n_instructions):
    B, L, E = tokens_pad.shape
    Hq = params["lstm_whh_t"].shape[0]
    N = n_instructions

    # One-time parameter restructuring (tiny XLA ops, done once outside the kernel).
    vext = jnp.concatenate([vocab, params["default_embedding"][None, :]], axis=0)   # (V+1, E)
    tag_proj = params["tag_w"] @ vext.T                                             # (E, V+1)
    vocab_z = jnp.concatenate([vocab, jnp.zeros((1, E), vocab.dtype)], axis=0)      # (V+1, E)

    # Gate-split (i, f, g, o) + bias-presummed LSTM parameters.
    lstm_wih_g = params["lstm_wih_t"].reshape(E, 4, Hq).transpose(1, 0, 2)           # (4, E, H)
    lstm_whh_g = params["lstm_whh_t"].reshape(Hq, 4, Hq).transpose(1, 0, 2)          # (4, H, H)
    lstm_b_g = (params["lstm_bih"] + params["lstm_bhh"]).reshape(4, 1, Hq)           # (4, 1, H)
    rnn_b = params["rnn_bih"] + params["rnn_bhh"]                                    # (1, E)

    tokens_flat = tokens_pad.reshape(B * L, E)

    kernel = functools.partial(_fused_kernel, B=B, L=L, N=N)
    vmem = pl.BlockSpec(memory_space=pltpu.MemorySpace.VMEM)

    instructions, encoded = pl.pallas_call(
        kernel,
        out_shape=(jax.ShapeDtypeStruct((B, N, E), jnp.float32),
                   jax.ShapeDtypeStruct((B, Hq), jnp.float32)),
        in_specs=[vmem] * 9,
        out_specs=(vmem, vmem),
    )(tokens_flat, tag_proj, vocab_z,
      lstm_wih_g, lstm_whh_g, lstm_b_g,
      params["rnn_wih_t"], params["rnn_whh_t"], rnn_b)

    return instructions, encoded


# ----------------------------- Pure-JAX reference -----------------------------
def reference_forward(vocab, tokens_pad, params, n_instructions):
    B, L, E = tokens_pad.shape
    Hq = params["lstm_whh_t"].shape[0]
    vext = jnp.concatenate([vocab, params["default_embedding"][None, :]], axis=0)
    tok = tokens_pad.reshape(B * L, E)
    sim = jax.nn.softmax(tok @ params["tag_w"] @ vext.T, axis=1)
    tagged = (sim[:, -1:] * tok + sim[:, :-1] @ vocab).reshape(B, L, E)
    h = jnp.zeros((B, Hq), jnp.float32)
    c = jnp.zeros((B, Hq), jnp.float32)
    for t in range(L):
        x = tagged[:, t]
        gates = (x @ params["lstm_wih_t"] + h @ params["lstm_whh_t"]
                 + params["lstm_bih"] + params["lstm_bhh"])
        i = jax.nn.sigmoid(gates[:, :Hq])
        f = jax.nn.sigmoid(gates[:, Hq:2 * Hq])
        g = jnp.tanh(gates[:, 2 * Hq:3 * Hq])
        o = jax.nn.sigmoid(gates[:, 3 * Hq:])
        c = f * c + i * g
        h = o * jnp.tanh(c)
    encoded = h
    hd = jnp.zeros((B, E), jnp.float32)
    hs = []
    for _ in range(n_instructions):
        pre = (encoded @ params["rnn_wih_t"] + params["rnn_bih"]
               + hd @ params["rnn_whh_t"] + params["rnn_bhh"])
        hd = jnp.maximum(pre, 0.0)
        hs.append(hd)
    hidden = jnp.stack(hs, 0).transpose(1, 0, 2)                 # (B, N, E)
    attn = jax.nn.softmax(hidden @ tagged.transpose(0, 2, 1), axis=-1)
    instructions = attn @ tagged
    return instructions, encoded


# ----------------------------- Main --------------------------------------------
if __name__ == "__main__":
    B, L, E, Hq, V, N = 2, 8, 32, 32, 10, 4   # batch, seq, embedding, encoded_q_size, vocab, n_instructions

    key = jax.random.PRNGKey(0)
    ks = jax.random.split(key, 10)

    params = {
        # Tagger: weight = eye(E), default_embedding ~ U[0,1) (as in torch init)
        "tag_w": jnp.eye(E, dtype=jnp.float32),
        "default_embedding": jax.random.uniform(ks[0], (E,), jnp.float32),
        # LSTM (input E, hidden Hq); weights stored pre-transposed for x @ W (gate order i,f,g,o)
        "lstm_wih_t": 0.2 * jax.random.normal(ks[1], (E, 4 * Hq), jnp.float32),
        "lstm_whh_t": 0.2 * jax.random.normal(ks[2], (Hq, 4 * Hq), jnp.float32),
        "lstm_bih": 0.1 * jax.random.normal(ks[3], (1, 4 * Hq), jnp.float32),
        "lstm_bhh": 0.1 * jax.random.normal(ks[4], (1, 4 * Hq), jnp.float32),
        # RNN decoder (input Hq, hidden E, relu)
        "rnn_wih_t": 0.2 * jax.random.normal(ks[5], (Hq, E), jnp.float32),
        "rnn_whh_t": 0.2 * jax.random.normal(ks[6], (E, E), jnp.float32),
        "rnn_bih": 0.1 * jax.random.normal(ks[7], (1, E), jnp.float32),
        "rnn_bhh": 0.1 * jax.random.normal(ks[8], (1, E), jnp.float32),
    }

    kin = jax.random.split(ks[9], 2)
    vocab = 0.5 * jax.random.normal(kin[0], (V, E), jnp.float32)
    tokens_pad = 0.5 * jax.random.normal(kin[1], (B, L, E), jnp.float32)

    fwd = jax.jit(functools.partial(instructions_model_forward, n_instructions=N))
    instructions, encoded = fwd(vocab, tokens_pad, params)
    jax.block_until_ready((instructions, encoded))

    # Sanity check against the pure-JAX reference of the PyTorch semantics.
    ref_instr, ref_enc = reference_forward(vocab, tokens_pad, params, N)
    assert instructions.shape == (B, N, E) and encoded.shape == (B, Hq)
    assert jnp.allclose(instructions, ref_instr, rtol=1e-2, atol=1e-2)
    assert jnp.allclose(encoded, ref_enc, rtol=1e-2, atol=1e-2)

    print("KERNEL_OK")
</pallas_src>

<mosaic_0001>
module attributes {stable_mosaic.version = 11 : i64} {
  func.func @_fused_kernel(%arg0: memref<16x32xf32, #tpu.memory_space<vmem>>, %arg1: memref<32x11xf32, #tpu.memory_space<vmem>>, %arg2: memref<11x32xf32, #tpu.memory_space<vmem>>, %arg3: memref<4x32x32xf32, #tpu.memory_space<vmem>>, %arg4: memref<4x32x32xf32, #tpu.memory_space<vmem>>, %arg5: memref<4x1x32xf32, #tpu.memory_space<vmem>>, %arg6: memref<32x32xf32, #tpu.memory_space<vmem>>, %arg7: memref<32x32xf32, #tpu.memory_space<vmem>>, %arg8: memref<1x32xf32, #tpu.memory_space<vmem>>, %arg9: memref<2x4x32xf32, #tpu.memory_space<vmem>>, %arg10: memref<2x32xf32, #tpu.memory_space<vmem>>) attributes {dimension_semantics = [], scalar_prefetch = 0 : i64, scratch_operands = 0 : i64, tpu.core_type = #tpu.core_type<tc>} {
    %c0 = arith.constant 0 : index
    %c0_0 = arith.constant 0 : index
    %0 = vector.load %arg0[%c0, %c0_0] : memref<16x32xf32, #tpu.memory_space<vmem>>, vector<16x32xf32>
    %c0_1 = arith.constant 0 : index
    %c0_2 = arith.constant 0 : index
    %1 = vector.load %arg1[%c0_1, %c0_2] : memref<32x11xf32, #tpu.memory_space<vmem>>, vector<32x11xf32>
    %cst = arith.constant dense<0.000000e+00> : vector<16x11xf32>
    %2 = tpu.matmul %0, %1, %cst {dimension_numbers = #tpu.dot_dimension_numbers<[1], [0], [0], [1], [0, 0, 1, 1], [], []>} : vector<16x32xf32>, vector<32x11xf32>, vector<16x11xf32> -> vector<16x11xf32>
    %cst_3 = arith.constant dense<0xFF800000> : vector<16xf32>
    %3 = vector.multi_reduction <maximumf>, %2, %cst_3 [1] : vector<16x11xf32> to vector<16xf32>
    %4 = vector.shape_cast %3 : vector<16xf32> to vector<16x1xf32>
    %5 = vector.broadcast %4 : vector<16x1xf32> to vector<16x11xf32>
    %6 = arith.subf %2, %5 : vector<16x11xf32>
    %7 = math.exp %6 : vector<16x11xf32>
    %cst_4 = arith.constant dense<0.000000e+00> : vector<16xf32>
    %8 = vector.multi_reduction <add>, %7, %cst_4 [1] : vector<16x11xf32> to vector<16xf32>
    %9 = vector.shape_cast %8 : vector<16xf32> to vector<16x1xf32>
    %10 = vector.broadcast %9 : vector<16x1xf32> to vector<16x11xf32>
    %11 = arith.divf %7, %10 : vector<16x11xf32>
    %12 = vector.extract_strided_slice %11 {offsets = [0, 10], sizes = [16, 1], strides = [1, 1]} : vector<16x11xf32> to vector<16x1xf32>
    %13 = vector.broadcast %12 : vector<16x1xf32> to vector<16x32xf32>
    %14 = arith.mulf %13, %0 : vector<16x32xf32>
    %c0_5 = arith.constant 0 : index
    %c0_6 = arith.constant 0 : index
    %15 = vector.load %arg2[%c0_5, %c0_6] : memref<11x32xf32, #tpu.memory_space<vmem>>, vector<11x32xf32>
    %cst_7 = arith.constant dense<0.000000e+00> : vector<16x32xf32>
    %16 = tpu.matmul %11, %15, %cst_7 {dimension_numbers = #tpu.dot_dimension_numbers<[1], [0], [0], [1], [0, 0, 1, 1], [], []>} : vector<16x11xf32>, vector<11x32xf32>, vector<16x32xf32> -> vector<16x32xf32>
    %17 = arith.addf %14, %16 : vector<16x32xf32>
    %c0_8 = arith.constant 0 : index
    %c0_9 = arith.constant 0 : index
    %c0_10 = arith.constant 0 : index
    %18 = vector.load %arg3[%c0_8, %c0_9, %c0_10] : memref<4x32x32xf32, #tpu.memory_space<vmem>>, vector<1x32x32xf32>
    %19 = vector.shape_cast %18 : vector<1x32x32xf32> to vector<32x32xf32>
    %cst_11 = arith.constant dense<0.000000e+00> : vector<16x32xf32>
    %20 = tpu.matmul %17, %19, %cst_11 {dimension_numbers = #tpu.dot_dimension_numbers<[1], [0], [0], [1], [0, 0, 1, 1], [], []>} : vector<16x32xf32>, vector<32x32xf32>, vector<16x32xf32> -> vector<16x32xf32>
    %c0_12 = arith.constant 0 : index
    %c0_13 = arith.constant 0 : index
    %c0_14 = arith.constant 0 : index
    %21 = vector.load %arg5[%c0_12, %c0_13, %c0_14] : memref<4x1x32xf32, #tpu.memory_space<vmem>>, vector<1x1x32xf32>
    %22 = vector.shape_cast %21 : vector<1x1x32xf32> to vector<1x32xf32>
    %23 = vector.broadcast %22 : vector<1x32xf32> to vector<16x32xf32>
    %24 = arith.addf %20, %23 : vector<16x32xf32>
    %c1 = arith.constant 1 : index
    %c0_15 = arith.constant 0 : index
    %c0_16 = arith.constant 0 : index
    %25 = vector.load %arg3[%c1, %c0_15, %c0_16] : memref<4x32x32xf32, #tpu.memory_space<vmem>>, vector<1x32x32xf32>
    %26 = vector.shape_cast %25 : vector<1x32x32xf32> to vector<32x32xf32>
    %cst_17 = arith.constant dense<0.000000e+00> : vector<16x32xf32>
    %27 = tpu.matmul %17, %26, %cst_17 {dimension_numbers = #tpu.dot_dimension_numbers<[1], [0], [0], [1], [0, 0, 1, 1], [], []>} : vector<16x32xf32>, vector<32x32xf32>, vector<16x32xf32> -> vector<16x32xf32>
    %c1_18 = arith.constant 1 : index
    %c0_19 = arith.constant 0 : index
    %c0_20 = arith.constant 0 : index
    %28 = vector.load %arg5[%c1_18, %c0_19, %c0_20] : memref<4x1x32xf32, #tpu.memory_space<vmem>>, vector<1x1x32xf32>
    %29 = vector.shape_cast %28 : vector<1x1x32xf32> to vector<1x32xf32>
    %30 = vector.broadcast %29 : vector<1x32xf32> to vector<16x32xf32>
    %31 = arith.addf %27, %30 : vector<16x32xf32>
    %c2 = arith.constant 2 : index
    %c0_21 = arith.constant 0 : index
    %c0_22 = arith.constant 0 : index
    %32 = vector.load %arg3[%c2, %c0_21, %c0_22] : memref<4x32x32xf32, #tpu.memory_space<vmem>>, vector<1x32x32xf32>
    %33 = vector.shape_cast %32 : vector<1x32x32xf32> to vector<32x32xf32>
    %cst_23 = arith.constant dense<0.000000e+00> : vector<16x32xf32>
    %34 = tpu.matmul %17, %33, %cst_23 {dimension_numbers = #tpu.dot_dimension_numbers<[1], [0], [0], [1], [0, 0, 1, 1], [], []>} : vector<16x32xf32>, vector<32x32xf32>, vector<16x32xf32> -> vector<16x32xf32>
    %c2_24 = arith.constant 2 : index
    %c0_25 = arith.constant 0 : index
    %c0_26 = arith.constant 0 : index
    %35 = vector.load %arg5[%c2_24, %c0_25, %c0_26] : memref<4x1x32xf32, #tpu.memory_space<vmem>>, vector<1x1x32xf32>
    %36 = vector.shape_cast %35 : vector<1x1x32xf32> to vector<1x32xf32>
    %37 = vector.broadcast %36 : vector<1x32xf32> to vector<16x32xf32>
    %38 = arith.addf %34, %37 : vector<16x32xf32>
    %c3 = arith.constant 3 : index
    %c0_27 = arith.constant 0 : index
    %c0_28 = arith.constant 0 : index
    %39 = vector.load %arg3[%c3, %c0_27, %c0_28] : memref<4x32x32xf32, #tpu.memory_space<vmem>>, vector<1x32x32xf32>
    %40 = vector.shape_cast %39 : vector<1x32x32xf32> to vector<32x32xf32>
    %cst_29 = arith.constant dense<0.000000e+00> : vector<16x32xf32>
    %41 = tpu.matmul %17, %40, %cst_29 {dimension_numbers = #tpu.dot_dimension_numbers<[1], [0], [0], [1], [0, 0, 1, 1], [], []>} : vector<16x32xf32>, vector<32x32xf32>, vector<16x32xf32> -> vector<16x32xf32>
    %c3_30 = arith.constant 3 : index
    %c0_31 = arith.constant 0 : index
    %c0_32 = arith.constant 0 : index
    %42 = vector.load %arg5[%c3_30, %c0_31, %c0_32] : memref<4x1x32xf32, #tpu.memory_space<vmem>>, vector<1x1x32xf32>
    %43 = vector.shape_cast %42 : vector<1x1x32xf32> to vector<1x32xf32>
    %44 = vector.broadcast %43 : vector<1x32xf32> to vector<16x32xf32>
    %45 = arith.addf %41, %44 : vector<16x32xf32>
    %c0_33 = arith.constant 0 : index
    %c0_34 = arith.constant 0 : index
    %c0_35 = arith.constant 0 : index
    %46 = vector.load %arg4[%c0_33, %c0_34, %c0_35] : memref<4x32x32xf32, #tpu.memory_space<vmem>>, vector<1x32x32xf32>
    %47 = vector.shape_cast %46 : vector<1x32x32xf32> to vector<32x32xf32>
    %c1_36 = arith.constant 1 : index
    %c0_37 = arith.constant 0 : index
    %c0_38 = arith.constant 0 : index
    %48 = vector.load %arg4[%c1_36, %c0_37, %c0_38] : memref<4x32x32xf32, #tpu.memory_space<vmem>>, vector<1x32x32xf32>
    %49 = vector.shape_cast %48 : vector<1x32x32xf32> to vector<32x32xf32>
    %c2_39 = arith.constant 2 : index
    %c0_40 = arith.constant 0 : index
    %c0_41 = arith.constant 0 : index
    %50 = vector.load %arg4[%c2_39, %c0_40, %c0_41] : memref<4x32x32xf32, #tpu.memory_space<vmem>>, vector<1x32x32xf32>
    %51 = vector.shape_cast %50 : vector<1x32x32xf32> to vector<32x32xf32>
    %c3_42 = arith.constant 3 : index
    %c0_43 = arith.constant 0 : index
    %c0_44 = arith.constant 0 : index
    %52 = vector.load %arg4[%c3_42, %c0_43, %c0_44] : memref<4x32x32xf32, #tpu.memory_space<vmem>>, vector<1x32x32xf32>
    %53 = vector.shape_cast %52 : vector<1x32x32xf32> to vector<32x32xf32>
    %cst_45 = arith.constant 0.000000e+00 : f32
    %54 = vector.broadcast %cst_45 : f32 to vector<2x32xf32>
    %cst_46 = arith.constant 0.000000e+00 : f32
    %55 = vector.broadcast %cst_46 : f32 to vector<2x32xf32>
    %56 = vector.extract_strided_slice %24 {offsets = [0, 0], sizes = [1, 32], strides = [1, 1]} : vector<16x32xf32> to vector<1x32xf32>
    %57 = vector.extract_strided_slice %24 {offsets = [8, 0], sizes = [1, 32], strides = [1, 1]} : vector<16x32xf32> to vector<1x32xf32>
    %58 = tpu.concatenate %56, %57 in 0 : vector<1x32xf32>, vector<1x32xf32> -> vector<2x32xf32>
    %cst_47 = arith.constant dense<0.000000e+00> : vector<2x32xf32>
    %59 = tpu.matmul %54, %47, %cst_47 {dimension_numbers = #tpu.dot_dimension_numbers<[1], [0], [0], [1], [0, 0, 1, 1], [], []>} : vector<2x32xf32>, vector<32x32xf32>, vector<2x32xf32> -> vector<2x32xf32>
    %60 = arith.addf %58, %59 : vector<2x32xf32>
    %61 = vector.extract_strided_slice %31 {offsets = [0, 0], sizes = [1, 32], strides = [1, 1]} : vector<16x32xf32> to vector<1x32xf32>
    %62 = vector.extract_strided_slice %31 {offsets = [8, 0], sizes = [1, 32], strides = [1, 1]} : vector<16x32xf32> to vector<1x32xf32>
    %63 = tpu.concatenate %61, %62 in 0 : vector<1x32xf32>, vector<1x32xf32> -> vector<2x32xf32>
    %cst_48 = arith.constant dense<0.000000e+00> : vector<2x32xf32>
    %64 = tpu.matmul %54, %49, %cst_48 {dimension_numbers = #tpu.dot_dimension_numbers<[1], [0], [0], [1], [0, 0, 1, 1], [], []>} : vector<2x32xf32>, vector<32x32xf32>, vector<2x32xf32> -> vector<2x32xf32>
    %65 = arith.addf %63, %64 : vector<2x32xf32>
    %66 = vector.extract_strided_slice %38 {offsets = [0, 0], sizes = [1, 32], strides = [1, 1]} : vector<16x32xf32> to vector<1x32xf32>
    %67 = vector.extract_strided_slice %38 {offsets = [8, 0], sizes = [1, 32], strides = [1, 1]} : vector<16x32xf32> to vector<1x32xf32>
    %68 = tpu.concatenate %66, %67 in 0 : vector<1x32xf32>, vector<1x32xf32> -> vector<2x32xf32>
    %cst_49 = arith.constant dense<0.000000e+00> : vector<2x32xf32>
    %69 = tpu.matmul %54, %51, %cst_49 {dimension_numbers = #tpu.dot_dimension_numbers<[1], [0], [0], [1], [0, 0, 1, 1], [], []>} : vector<2x32xf32>, vector<32x32xf32>, vector<2x32xf32> -> vector<2x32xf32>
    %70 = arith.addf %68, %69 : vector<2x32xf32>
    %71 = vector.extract_strided_slice %45 {offsets = [0, 0], sizes = [1, 32], strides = [1, 1]} : vector<16x32xf32> to vector<1x32xf32>
    %72 = vector.extract_strided_slice %45 {offsets = [8, 0], sizes = [1, 32], strides = [1, 1]} : vector<16x32xf32> to vector<1x32xf32>
    %73 = tpu.concatenate %71, %72 in 0 : vector<1x32xf32>, vector<1x32xf32> -> vector<2x32xf32>
    %cst_50 = arith.constant dense<0.000000e+00> : vector<2x32xf32>
    %74 = tpu.matmul %54, %53, %cst_50 {dimension_numbers = #tpu.dot_dimension_numbers<[1], [0], [0], [1], [0, 0, 1, 1], [], []>} : vector<2x32xf32>, vector<32x32xf32>, vector<2x32xf32> -> vector<2x32xf32>
    %75 = arith.addf %73, %74 : vector<2x32xf32>
    %76 = arith.negf %60 : vector<2x32xf32>
    %77 = math.exp %76 : vector<2x32xf32>
    %cst_51 = arith.constant 1.000000e+00 : f32
    %78 = vector.broadcast %cst_51 : f32 to vector<2x32xf32>
    %79 = arith.addf %78, %77 : vector<2x32xf32>
    %80 = arith.divf %78, %79 : vector<2x32xf32>
    %81 = arith.negf %65 : vector<2x32xf32>
    %82 = math.exp %81 : vector<2x32xf32>
    %cst_52 = arith.constant 1.000000e+00 : f32
    %83 = vector.broadcast %cst_52 : f32 to vector<2x32xf32>
    %84 = arith.addf %83, %82 : vector<2x32xf32>
    %85 = arith.divf %83, %84 : vector<2x32xf32>
    %86 = math.tanh %70 : vector<2x32xf32>
    %87 = arith.negf %75 : vector<2x32xf32>
    %88 = math.exp %87 : vector<2x32xf32>
    %cst_53 = arith.constant 1.000000e+00 : f32
    %89 = vector.broadcast %cst_53 : f32 to vector<2x32xf32>
    %90 = arith.addf %89, %88 : vector<2x32xf32>
    %91 = arith.divf %89, %90 : vector<2x32xf32>
    %92 = arith.mulf %85, %55 : vector<2x32xf32>
    %93 = arith.mulf %80, %86 : vector<2x32xf32>
    %94 = arith.addf %92, %93 : vector<2x32xf32>
    %95 = math.tanh %94 : vector<2x32xf32>
    %96 = arith.mulf %91, %95 : vector<2x32xf32>
    %97 = vector.extract_strided_slice %24 {offsets = [1, 0], sizes = [1, 32], strides = [1, 1]} : vector<16x32xf32> to vector<1x32xf32>
    %98 = vector.extract_strided_slice %24 {offsets = [9, 0], sizes = [1, 32], strides = [1, 1]} : vector<16x32xf32> to vector<1x32xf32>
    %99 = tpu.concatenate %97, %98 in 0 : vector<1x32xf32>, vector<1x32xf32> -> vector<2x32xf32>
    %cst_54 = arith.constant dense<0.000000e+00> : vector<2x32xf32>
    %100 = tpu.matmul %96, %47, %cst_54 {dimension_numbers = #tpu.dot_dimension_numbers<[1], [0], [0], [1], [0, 0, 1, 1], [], []>} : vector<2x32xf32>, vector<32x32xf32>, vector<2x32xf32> -> vector<2x32xf32>
    %101 = arith.addf %99, %100 : vector<2x32xf32>
    %102 = vector.extract_strided_slice %31 {offsets = [1, 0], sizes = [1, 32], strides = [1, 1]} : vector<16x32xf32> to vector<1x32xf32>
    %103 = vector.extract_strided_slice %31 {offsets = [9, 0], sizes = [1, 32], strides = [1, 1]} : vector<16x32xf32> to vector<1x32xf32>
    %104 = tpu.concatenate %102, %103 in 0 : vector<1x32xf32>, vector<1x32xf32> -> vector<2x32xf32>
    %cst_55 = arith.constant dense<0.000000e+00> : vector<2x32xf32>
    %105 = tpu.matmul %96, %49, %cst_55 {dimension_numbers = #tpu.dot_dimension_numbers<[1], [0], [0], [1], [0, 0, 1, 1], [], []>} : vector<2x32xf32>, vector<32x32xf32>, vector<2x32xf32> -> vector<2x32xf32>
    %106 = arith.addf %104, %105 : vector<2x32xf32>
    %107 = vector.extract_strided_slice %38 {offsets = [1, 0], sizes = [1, 32], strides = [1, 1]} : vector<16x32xf32> to vector<1x32xf32>
    %108 = vector.extract_strided_slice %38 {offsets = [9, 0], sizes = [1, 32], strides = [1, 1]} : vector<16x32xf32> to vector<1x32xf32>
    %109 = tpu.concatenate %107, %108 in 0 : vector<1x32xf32>, vector<1x32xf32> -> vector<2x32xf32>
    %cst_56 = arith.constant dense<0.000000e+00> : vector<2x32xf32>
    %110 = tpu.matmul %96, %51, %cst_56 {dimension_numbers = #tpu.dot_dimension_numbers<[1], [0], [0], [1], [0, 0, 1, 1], [], []>} : vector<2x32xf32>, vector<32x32xf32>, vector<2x32xf32> -> vector<2x32xf32>
    %111 = arith.addf %109, %110 : vector<2x32xf32>
    %112 = vector.extract_strided_slice %45 {offsets = [1, 0], sizes = [1, 32], strides = [1, 1]} : vector<16x32xf32> to vector<1x32xf32>
    %113 = vector.extract_strided_slice %45 {offsets = [9, 0], sizes = [1, 32], strides = [1, 1]} : vector<16x32xf32> to vector<1x32xf32>
    %114 = tpu.concatenate %112, %113 in 0 : vector<1x32xf32>, vector<1x32xf32> -> vector<2x32xf32>
    %cst_57 = arith.constant dense<0.000000e+00> : vector<2x32xf32>
    %115 = tpu.matmul %96, %53, %cst_57 {dimension_numbers = #tpu.dot_dimension_numbers<[1], [0], [0], [1], [0, 0, 1, 1], [], []>} : vector<2x32xf32>, vector<32x32xf32>, vector<2x32xf32> -> vector<2x32xf32>
    %116 = arith.addf %114, %115 : vector<2x32xf32>
    %117 = arith.negf %101 : vector<2x32xf32>
    %118 = math.exp %117 : vector<2x32xf32>
    %cst_58 = arith.constant 1.000000e+00 : f32
    %119 = vector.broadcast %cst_58 : f32 to vector<2x32xf32>
    %120 = arith.addf %119, %118 : vector<2x32xf32>
    %121 = arith.divf %119, %120 : vector<2x32xf32>
    %122 = arith.negf %106 : vector<2x32xf32>
    %123 = math.exp %122 : vector<2x32xf32>
    %cst_59 = arith.constant 1.000000e+00 : f32
    %124 = vector.broadcast %cst_59 : f32 to vector<2x32xf32>
    %125 = arith.addf %124, %123 : vector<2x32xf32>
    %126 = arith.divf %124, %125 : vector<2x32xf32>
    %127 = math.tanh %111 : vector<2x32xf32>
    %128 = arith.negf %116 : vector<2x32xf32>
    %129 = math.exp %128 : vector<2x32xf32>
    %cst_60 = arith.constant 1.000000e+00 : f32
    %130 = vector.broadcast %cst_60 : f32 to vector<2x32xf32>
    %131 = arith.addf %130, %129 : vector<2x32xf32>
    %132 = arith.divf %130, %131 : vector<2x32xf32>
    %133 = arith.mulf %126, %94 : vector<2x32xf32>
    %134 = arith.mulf %121, %127 : vector<2x32xf32>
    %135 = arith.addf %133, %134 : vector<2x32xf32>
    %136 = math.tanh %135 : vector<2x32xf32>
    %137 = arith.mulf %132, %136 : vector<2x32xf32>
    %138 = vector.extract_strided_slice %24 {offsets = [2, 0], sizes = [1, 32], strides = [1, 1]} : vector<16x32xf32> to vector<1x32xf32>
    %139 = vector.extract_strided_slice %24 {offsets = [10, 0], sizes = [1, 32], strides = [1, 1]} : vector<16x32xf32> to vector<1x32xf32>
    %140 = tpu.concatenate %138, %139 in 0 : vector<1x32xf32>, vector<1x32xf32> -> vector<2x32xf32>
    %cst_61 = arith.constant dense<0.000000e+00> : vector<2x32xf32>
    %141 = tpu.matmul %137, %47, %cst_61 {dimension_numbers = #tpu.dot_dimension_numbers<[1], [0], [0], [1], [0, 0, 1, 1], [], []>} : vector<2x32xf32>, vector<32x32xf32>, vector<2x32xf32> -> vector<2x32xf32>
    %142 = arith.addf %140, %141 : vector<2x32xf32>
    %143 = vector.extract_strided_slice %31 {offsets = [2, 0], sizes = [1, 32], strides = [1, 1]} : vector<16x32xf32> to vector<1x32xf32>
    %144 = vector.extract_strided_slice %31 {offsets = [10, 0], sizes = [1, 32], strides = [1, 1]} : vector<16x32xf32> to vector<1x32xf32>
    %145 = tpu.concatenate %143, %144 in 0 : vector<1x32xf32>, vector<1x32xf32> -> vector<2x32xf32>
    %cst_62 = arith.constant dense<0.000000e+00> : vector<2x32xf32>
    %146 = tpu.matmul %137, %49, %cst_62 {dimension_numbers = #tpu.dot_dimension_numbers<[1], [0], [0], [1], [0, 0, 1, 1], [], []>} : vector<2x32xf32>, vector<32x32xf32>, vector<2x32xf32> -> vector<2x32xf32>
    %147 = arith.addf %145, %146 : vector<2x32xf32>
    %148 = vector.extract_strided_slice %38 {offsets = [2, 0], sizes = [1, 32], strides = [1, 1]} : vector<16x32xf32> to vector<1x32xf32>
    %149 = vector.extract_strided_slice %38 {offsets = [10, 0], sizes = [1, 32], strides = [1, 1]} : vector<16x32xf32> to vector<1x32xf32>
    %150 = tpu.concatenate %148, %149 in 0 : vector<1x32xf32>, vector<1x32xf32> -> vector<2x32xf32>
    %cst_63 = arith.constant dense<0.000000e+00> : vector<2x32xf32>
    %151 = tpu.matmul %137, %51, %cst_63 {dimension_numbers = #tpu.dot_dimension_numbers<[1], [0], [0], [1], [0, 0, 1, 1], [], []>} : vector<2x32xf32>, vector<32x32xf32>, vector<2x32xf32> -> vector<2x32xf32>
    %152 = arith.addf %150, %151 : vector<2x32xf32>
    %153 = vector.extract_strided_slice %45 {offsets = [2, 0], sizes = [1, 32], strides = [1, 1]} : vector<16x32xf32> to vector<1x32xf32>
    %154 = vector.extract_strided_slice %45 {offsets = [10, 0], sizes = [1, 32], strides = [1, 1]} : vector<16x32xf32> to vector<1x32xf32>
    %155 = tpu.concatenate %153, %154 in 0 : vector<1x32xf32>, vector<1x32xf32> -> vector<2x32xf32>
    %cst_64 = arith.constant dense<0.000000e+00> : vector<2x32xf32>
    %156 = tpu.matmul %137, %53, %cst_64 {dimension_numbers = #tpu.dot_dimension_numbers<[1], [0], [0], [1], [0, 0, 1, 1], [], []>} : vector<2x32xf32>, vector<32x32xf32>, vector<2x32xf32> -> vector<2x32xf32>
    %157 = arith.addf %155, %156 : vector<2x32xf32>
    %158 = arith.negf %142 : vector<2x32xf32>
    %159 = math.exp %158 : vector<2x32xf32>
    %cst_65 = arith.constant 1.000000e+00 : f32
    %160 = vector.broadcast %cst_65 : f32 to vector<2x32xf32>
    %161 = arith.addf %160, %159 : vector<2x32xf32>
    %162 = arith.divf %160, %161 : vector<2x32xf32>
    %163 = arith.negf %147 : vector<2x32xf32>
    %164 = math.exp %163 : vector<2x32xf32>
    %cst_66 = arith.constant 1.000000e+00 : f32
    %165 = vector.broadcast %cst_66 : f32 to vector<2x32xf32>
    %166 = arith.addf %165, %164 : vector<2x32xf32>
    %167 = arith.divf %165, %166 : vector<2x32xf32>
    %168 = math.tanh %152 : vector<2x32xf32>
    %169 = arith.negf %157 : vector<2x32xf32>
    %170 = math.exp %169 : vector<2x32xf32>
    %cst_67 = arith.constant 1.000000e+00 : f32
    %171 = vector.broadcast %cst_67 : f32 to vector<2x32xf32>
    %172 = arith.addf %171, %170 : vector<2x32xf32>
    %173 = arith.divf %171, %172 : vector<2x32xf32>
    %174 = arith.mulf %167, %135 : vector<2x32xf32>
    %175 = arith.mulf %162, %168 : vector<2x32xf32>
    %176 = arith.addf %174, %175 : vector<2x32xf32>
    %177 = math.tanh %176 : vector<2x32xf32>
    %178 = arith.mulf %173, %177 : vector<2x32xf32>
    %179 = vector.extract_strided_slice %24 {offsets = [3, 0], sizes = [1, 32], strides = [1, 1]} : vector<16x32xf32> to vector<1x32xf32>
    %180 = vector.extract_strided_slice %24 {offsets = [11, 0], sizes = [1, 32], strides = [1, 1]} : vector<16x32xf32> to vector<1x32xf32>
    %181 = tpu.concatenate %179, %180 in 0 : vector<1x32xf32>, vector<1x32xf32> -> vector<2x32xf32>
    %cst_68 = arith.constant dense<0.000000e+00> : vector<2x32xf32>
    %182 = tpu.matmul %178, %47, %cst_68 {dimension_numbers = #tpu.dot_dimension_numbers<[1], [0], [0], [1], [0, 0, 1, 1], [], []>} : vector<2x32xf32>, vector<32x32xf32>, vector<2x32xf32> -> vector<2x32xf32>
    %183 = arith.addf %181, %182 : vector<2x32xf32>
    %184 = vector.extract_strided_slice %31 {offsets = [3, 0], sizes = [1, 32], strides = [1, 1]} : vector<16x32xf32> to vector<1x32xf32>
    %185 = vector.extract_strided_slice %31 {offsets = [11, 0], sizes = [1, 32], strides = [1, 1]} : vector<16x32xf32> to vector<1x32xf32>
    %186 = tpu.concatenate %184, %185 in 0 : vector<1x32xf32>, vector<1x32xf32> -> vector<2x32xf32>
    %cst_69 = arith.constant dense<0.000000e+00> : vector<2x32xf32>
    %187 = tpu.matmul %178, %49, %cst_69 {dimension_numbers = #tpu.dot_dimension_numbers<[1], [0], [0], [1], [0, 0, 1, 1], [], []>} : vector<2x32xf32>, vector<32x32xf32>, vector<2x32xf32> -> vector<2x32xf32>
    %188 = arith.addf %186, %187 : vector<2x32xf32>
    %189 = vector.extract_strided_slice %38 {offsets = [3, 0], sizes = [1, 32], strides = [1, 1]} : vector<16x32xf32> to vector<1x32xf32>
    %190 = vector.extract_strided_slice %38 {offsets = [11, 0], sizes = [1, 32], strides = [1, 1]} : vector<16x32xf32> to vector<1x32xf32>
    %191 = tpu.concatenate %189, %190 in 0 : vector<1x32xf32>, vector<1x32xf32> -> vector<2x32xf32>
    %cst_70 = arith.constant dense<0.000000e+00> : vector<2x32xf32>
    %192 = tpu.matmul %178, %51, %cst_70 {dimension_numbers = #tpu.dot_dimension_numbers<[1], [0], [0], [1], [0, 0, 1, 1], [], []>} : vector<2x32xf32>, vector<32x32xf32>, vector<2x32xf32> -> vector<2x32xf32>
    %193 = arith.addf %191, %192 : vector<2x32xf32>
    %194 = vector.extract_strided_slice %45 {offsets = [3, 0], sizes = [1, 32], strides = [1, 1]} : vector<16x32xf32> to vector<1x32xf32>
    %195 = vector.extract_strided_slice %45 {offsets = [11, 0], sizes = [1, 32], strides = [1, 1]} : vector<16x32xf32> to vector<1x32xf32>
    %196 = tpu.concatenate %194, %195 in 0 : vector<1x32xf32>, vector<1x32xf32> -> vector<2x32xf32>
    %cst_71 = arith.constant dense<0.000000e+00> : vector<2x32xf32>
    %197 = tpu.matmul %178, %53, %cst_71 {dimension_numbers = #tpu.dot_dimension_numbers<[1], [0], [0], [1], [0, 0, 1, 1], [], []>} : vector<2x32xf32>, vector<32x32xf32>, vector<2x32xf32> -> vector<2x32xf32>
    %198 = arith.addf %196, %197 : vector<2x32xf32>
    %199 = arith.negf %183 : vector<2x32xf32>
    %200 = math.exp %199 : vector<2x32xf32>
    %cst_72 = arith.constant 1.000000e+00 : f32
    %201 = vector.broadcast %cst_72 : f32 to vector<2x32xf32>
    %202 = arith.addf %201, %200 : vector<2x32xf32>
    %203 = arith.divf %201, %202 : vector<2x32xf32>
    %204 = arith.negf %188 : vector<2x32xf32>
    %205 = math.exp %204 : vector<2x32xf32>
    %cst_73 = arith.constant 1.000000e+00 : f32
    %206 = vector.broadcast %cst_73 : f32 to vector<2x32xf32>
    %207 = arith.addf %206, %205 : vector<2x32xf32>
    %208 = arith.divf %206, %207 : vector<2x32xf32>
    %209 = math.tanh %193 : vector<2x32xf32>
    %210 = arith.negf %198 : vector<2x32xf32>
    %211 = math.exp %210 : vector<2x32xf32>
    %cst_74 = arith.constant 1.000000e+00 : f32
    %212 = vector.broadcast %cst_74 : f32 to vector<2x32xf32>
    %213 = arith.addf %212, %211 : vector<2x32xf32>
    %214 = arith.divf %212, %213 : vector<2x32xf32>
    %215 = arith.mulf %208, %176 : vector<2x32xf32>
    %216 = arith.mulf %203, %209 : vector<2x32xf32>
    %217 = arith.addf %215, %216 : vector<2x32xf32>
    %218 = math.tanh %217 : vector<2x32xf32>
    %219 = arith.mulf %214, %218 : vector<2x32xf32>
    %220 = vector.extract_strided_slice %24 {offsets = [4, 0], sizes = [1, 32], strides = [1, 1]} : vector<16x32xf32> to vector<1x32xf32>
    %221 = vector.extract_strided_slice %24 {offsets = [12, 0], sizes = [1, 32], strides = [1, 1]} : vector<16x32xf32> to vector<1x32xf32>
    %222 = tpu.concatenate %220, %221 in 0 : vector<1x32xf32>, vector<1x32xf32> -> vector<2x32xf32>
    %cst_75 = arith.constant dense<0.000000e+00> : vector<2x32xf32>
    %223 = tpu.matmul %219, %47, %cst_75 {dimension_numbers = #tpu.dot_dimension_numbers<[1], [0], [0], [1], [0, 0, 1, 1], [], []>} : vector<2x32xf32>, vector<32x32xf32>, vector<2x32xf32> -> vector<2x32xf32>
    %224 = arith.addf %222, %223 : vector<2x32xf32>
    %225 = vector.extract_strided_slice %31 {offsets = [4, 0], sizes = [1, 32], strides = [1, 1]} : vector<16x32xf32> to vector<1x32xf32>
    %226 = vector.extract_strided_slice %31 {offsets = [12, 0], sizes = [1, 32], strides = [1, 1]} : vector<16x32xf32> to vector<1x32xf32>
    %227 = tpu.concatenate %225, %226 in 0 : vector<1x32xf32>, vector<1x32xf32> -> vector<2x32xf32>
    %cst_76 = arith.constant dense<0.000000e+00> : vector<2x32xf32>
    %228 = tpu.matmul %219, %49, %cst_76 {dimension_numbers = #tpu.dot_dimension_numbers<[1], [0], [0], [1], [0, 0, 1, 1], [], []>} : vector<2x32xf32>, vector<32x32xf32>, vector<2x32xf32> -> vector<2x32xf32>
    %229 = arith.addf %227, %228 : vector<2x32xf32>
    %230 = vector.extract_strided_slice %38 {offsets = [4, 0], sizes = [1, 32], strides = [1, 1]} : vector<16x32xf32> to vector<1x32xf32>
    %231 = vector.extract_strided_slice %38 {offsets = [12, 0], sizes = [1, 32], strides = [1, 1]} : vector<16x32xf32> to vector<1x32xf32>
    %232 = tpu.concatenate %230, %231 in 0 : vector<1x32xf32>, vector<1x32xf32> -> vector<2x32xf32>
    %cst_77 = arith.constant dense<0.000000e+00> : vector<2x32xf32>
    %233 = tpu.matmul %219, %51, %cst_77 {dimension_numbers = #tpu.dot_dimension_numbers<[1], [0], [0], [1], [0, 0, 1, 1], [], []>} : vector<2x32xf32>, vector<32x32xf32>, vector<2x32xf32> -> vector<2x32xf32>
    %234 = arith.addf %232, %233 : vector<2x32xf32>
    %235 = vector.extract_strided_slice %45 {offsets = [4, 0], sizes = [1, 32], strides = [1, 1]} : vector<16x32xf32> to vector<1x32xf32>
    %236 = vector.extract_strided_slice %45 {offsets = [12, 0], sizes = [1, 32], strides = [1, 1]} : vector<16x32xf32> to vector<1x32xf32>
    %237 = tpu.concatenate %235, %236 in 0 : vector<1x32xf32>, vector<1x32xf32> -> vector<2x32xf32>
    %cst_78 = arith.constant dense<0.000000e+00> : vector<2x32xf32>
    %238 = tpu.matmul %219, %53, %cst_78 {dimension_numbers = #tpu.dot_dimension_numbers<[1], [0], [0], [1], [0, 0, 1, 1], [], []>} : vector<2x32xf32>, vector<32x32xf32>, vector<2x32xf32> -> vector<2x32xf32>
    %239 = arith.addf %237, %238 : vector<2x32xf32>
    %240 = arith.negf %224 : vector<2x32xf32>
    %241 = math.exp %240 : vector<2x32xf32>
    %cst_79 = arith.constant 1.000000e+00 : f32
    %242 = vector.broadcast %cst_79 : f32 to vector<2x32xf32>
    %243 = arith.addf %242, %241 : vector<2x32xf32>
    %244 = arith.divf %242, %243 : vector<2x32xf32>
    %245 = arith.negf %229 : vector<2x32xf32>
    %246 = math.exp %245 : vector<2x32xf32>
    %cst_80 = arith.constant 1.000000e+00 : f32
    %247 = vector.broadcast %cst_80 : f32 to vector<2x32xf32>
    %248 = arith.addf %247, %246 : vector<2x32xf32>
    %249 = arith.divf %247, %248 : vector<2x32xf32>
    %250 = math.tanh %234 : vector<2x32xf32>
    %251 = arith.negf %239 : vector<2x32xf32>
    %252 = math.exp %251 : vector<2x32xf32>
    %cst_81 = arith.constant 1.000000e+00 : f32
    %253 = vector.broadcast %cst_81 : f32 to vector<2x32xf32>
    %254 = arith.addf %253, %252 : vector<2x32xf32>
    %255 = arith.divf %253, %254 : vector<2x32xf32>
    %256 = arith.mulf %249, %217 : vector<2x32xf32>
    %257 = arith.mulf %244, %250 : vector<2x32xf32>
    %258 = arith.addf %256, %257 : vector<2x32xf32>
    %259 = math.tanh %258 : vector<2x32xf32>
    %260 = arith.mulf %255, %259 : vector<2x32xf32>
    %261 = vector.extract_strided_slice %24 {offsets = [5, 0], sizes = [1, 32], strides = [1, 1]} : vector<16x32xf32> to vector<1x32xf32>
    %262 = vector.extract_strided_slice %24 {offsets = [13, 0], sizes = [1, 32], strides = [1, 1]} : vector<16x32xf32> to vector<1x32xf32>
    %263 = tpu.concatenate %261, %262 in 0 : vector<1x32xf32>, vector<1x32xf32> -> vector<2x32xf32>
    %cst_82 = arith.constant dense<0.000000e+00> : vector<2x32xf32>
    %264 = tpu.matmul %260, %47, %cst_82 {dimension_numbers = #tpu.dot_dimension_numbers<[1], [0], [0], [1], [0, 0, 1, 1], [], []>} : vector<2x32xf32>, vector<32x32xf32>, vector<2x32xf32> -> vector<2x32xf32>
    %265 = arith.addf %263, %264 : vector<2x32xf32>
    %266 = vector.extract_strided_slice %31 {offsets = [5, 0], sizes = [1, 32], strides = [1, 1]} : vector<16x32xf32> to vector<1x32xf32>
    %267 = vector.extract_strided_slice %31 {offsets = [13, 0], sizes = [1, 32], strides = [1, 1]} : vector<16x32xf32> to vector<1x32xf32>
    %268 = tpu.concatenate %266, %267 in 0 : vector<1x32xf32>, vector<1x32xf32> -> vector<2x32xf32>
    %cst_83 = arith.constant dense<0.000000e+00> : vector<2x32xf32>
    %269 = tpu.matmul %260, %49, %cst_83 {dimension_numbers = #tpu.dot_dimension_numbers<[1], [0], [0], [1], [0, 0, 1, 1], [], []>} : vector<2x32xf32>, vector<32x32xf32>, vector<2x32xf32> -> vector<2x32xf32>
    %270 = arith.addf %268, %269 : vector<2x32xf32>
    %271 = vector.extract_strided_slice %38 {offsets = [5, 0], sizes = [1, 32], strides = [1, 1]} : vector<16x32xf32> to vector<1x32xf32>
    %272 = vector.extract_strided_slice %38 {offsets = [13, 0], sizes = [1, 32], strides = [1, 1]} : vector<16x32xf32> to vector<1x32xf32>
    %273 = tpu.concatenate %271, %272 in 0 : vector<1x32xf32>, vector<1x32xf32> -> vector<2x32xf32>
    %cst_84 = arith.constant dense<0.000000e+00> : vector<2x32xf32>
    %274 = tpu.matmul %260, %51, %cst_84 {dimension_numbers = #tpu.dot_dimension_numbers<[1], [0], [0], [1], [0, 0, 1, 1], [], []>} : vector<2x32xf32>, vector<32x32xf32>, vector<2x32xf32> -> vector<2x32xf32>
    %275 = arith.addf %273, %274 : vector<2x32xf32>
    %276 = vector.extract_strided_slice %45 {offsets = [5, 0], sizes = [1, 32], strides = [1, 1]} : vector<16x32xf32> to vector<1x32xf32>
    %277 = vector.extract_strided_slice %45 {offsets = [13, 0], sizes = [1, 32], strides = [1, 1]} : vector<16x32xf32> to vector<1x32xf32>
    %278 = tpu.concatenate %276, %277 in 0 : vector<1x32xf32>, vector<1x32xf32> -> vector<2x32xf32>
    %cst_85 = arith.constant dense<0.000000e+00> : vector<2x32xf32>
    %279 = tpu.matmul %260, %53, %cst_85 {dimension_numbers = #tpu.dot_dimension_numbers<[1], [0], [0], [1], [0, 0, 1, 1], [], []>} : vector<2x32xf32>, vector<32x32xf32>, vector<2x32xf32> -> vector<2x32xf32>
    %280 = arith.addf %278, %279 : vector<2x32xf32>
    %281 = arith.negf %265 : vector<2x32xf32>
    %282 = math.exp %281 : vector<2x32xf32>
    %cst_86 = arith.constant 1.000000e+00 : f32
    %283 = vector.broadcast %cst_86 : f32 to vector<2x32xf32>
    %284 = arith.addf %283, %282 : vector<2x32xf32>
    %285 = arith.divf %283, %284 : vector<2x32xf32>
    %286 = arith.negf %270 : vector<2x32xf32>
    %287 = math.exp %286 : vector<2x32xf32>
    %cst_87 = arith.constant 1.000000e+00 : f32
    %288 = vector.broadcast %cst_87 : f32 to vector<2x32xf32>
    %289 = arith.addf %288, %287 : vector<2x32xf32>
    %290 = arith.divf %288, %289 : vector<2x32xf32>
    %291 = math.tanh %275 : vector<2x32xf32>
    %292 = arith.negf %280 : vector<2x32xf32>
    %293 = math.exp %292 : vector<2x32xf32>
    %cst_88 = arith.constant 1.000000e+00 : f32
    %294 = vector.broadcast %cst_88 : f32 to vector<2x32xf32>
    %295 = arith.addf %294, %293 : vector<2x32xf32>
    %296 = arith.divf %294, %295 : vector<2x32xf32>
    %297 = arith.mulf %290, %258 : vector<2x32xf32>
    %298 = arith.mulf %285, %291 : vector<2x32xf32>
    %299 = arith.addf %297, %298 : vector<2x32xf32>
    %300 = math.tanh %299 : vector<2x32xf32>
    %301 = arith.mulf %296, %300 : vector<2x32xf32>
    %302 = vector.extract_strided_slice %24 {offsets = [6, 0], sizes = [1, 32], strides = [1, 1]} : vector<16x32xf32> to vector<1x32xf32>
    %303 = vector.extract_strided_slice %24 {offsets = [14, 0], sizes = [1, 32], strides = [1, 1]} : vector<16x32xf32> to vector<1x32xf32>
    %304 = tpu.concatenate %302, %303 in 0 : vector<1x32xf32>, vector<1x32xf32> -> vector<2x32xf32>
    %cst_89 = arith.constant dense<0.000000e+00> : vector<2x32xf32>
    %305 = tpu.matmul %301, %47, %cst_89 {dimension_numbers = #tpu.dot_dimension_numbers<[1], [0], [0], [1], [0, 0, 1, 1], [], []>} : vector<2x32xf32>, vector<32x32xf32>, vector<2x32xf32> -> vector<2x32xf32>
    %306 = arith.addf %304, %305 : vector<2x32xf32>
    %307 = vector.extract_strided_slice %31 {offsets = [6, 0], sizes = [1, 32], strides = [1, 1]} : vector<16x32xf32> to vector<1x32xf32>
    %308 = vector.extract_strided_slice %31 {offsets = [14, 0], sizes = [1, 32], strides = [1, 1]} : vector<16x32xf32> to vector<1x32xf32>
    %309 = tpu.concatenate %307, %308 in 0 : vector<1x32xf32>, vector<1x32xf32> -> vector<2x32xf32>
    %cst_90 = arith.constant dense<0.000000e+00> : vector<2x32xf32>
    %310 = tpu.matmul %301, %49, %cst_90 {dimension_numbers = #tpu.dot_dimension_numbers<[1], [0], [0], [1], [0, 0, 1, 1], [], []>} : vector<2x32xf32>, vector<32x32xf32>, vector<2x32xf32> -> vector<2x32xf32>
    %311 = arith.addf %309, %310 : vector<2x32xf32>
    %312 = vector.extract_strided_slice %38 {offsets = [6, 0], sizes = [1, 32], strides = [1, 1]} : vector<16x32xf32> to vector<1x32xf32>
    %313 = vector.extract_strided_slice %38 {offsets = [14, 0], sizes = [1, 32], strides = [1, 1]} : vector<16x32xf32> to vector<1x32xf32>
    %314 = tpu.concatenate %312, %313 in 0 : vector<1x32xf32>, vector<1x32xf32> -> vector<2x32xf32>
    %cst_91 = arith.constant dense<0.000000e+00> : vector<2x32xf32>
    %315 = tpu.matmul %301, %51, %cst_91 {dimension_numbers = #tpu.dot_dimension_numbers<[1], [0], [0], [1], [0, 0, 1, 1], [], []>} : vector<2x32xf32>, vector<32x32xf32>, vector<2x32xf32> -> vector<2x32xf32>
    %316 = arith.addf %314, %315 : vector<2x32xf32>
    %317 = vector.extract_strided_slice %45 {offsets = [6, 0], sizes = [1, 32], strides = [1, 1]} : vector<16x32xf32> to vector<1x32xf32>
    %318 = vector.extract_strided_slice %45 {offsets = [14, 0], sizes = [1, 32], strides = [1, 1]} : vector<16x32xf32> to vector<1x32xf32>
    %319 = tpu.concatenate %317, %318 in 0 : vector<1x32xf32>, vector<1x32xf32> -> vector<2x32xf32>
    %cst_92 = arith.constant dense<0.000000e+00> : vector<2x32xf32>
    %320 = tpu.matmul %301, %53, %cst_92 {dimension_numbers = #tpu.dot_dimension_numbers<[1], [0], [0], [1], [0, 0, 1, 1], [], []>} : vector<2x32xf32>, vector<32x32xf32>, vector<2x32xf32> -> vector<2x32xf32>
    %321 = arith.addf %319, %320 : vector<2x32xf32>
    %322 = arith.negf %306 : vector<2x32xf32>
    %323 = math.exp %322 : vector<2x32xf32>
    %cst_93 = arith.constant 1.000000e+00 : f32
    %324 = vector.broadcast %cst_93 : f32 to vector<2x32xf32>
    %325 = arith.addf %324, %323 : vector<2x32xf32>
    %326 = arith.divf %324, %325 : vector<2x32xf32>
    %327 = arith.negf %311 : vector<2x32xf32>
    %328 = math.exp %327 : vector<2x32xf32>
    %cst_94 = arith.constant 1.000000e+00 : f32
    %329 = vector.broadcast %cst_94 : f32 to vector<2x32xf32>
    %330 = arith.addf %329, %328 : vector<2x32xf32>
    %331 = arith.divf %329, %330 : vector<2x32xf32>
    %332 = math.tanh %316 : vector<2x32xf32>
    %333 = arith.negf %321 : vector<2x32xf32>
    %334 = math.exp %333 : vector<2x32xf32>
    %cst_95 = arith.constant 1.000000e+00 : f32
    %335 = vector.broadcast %cst_95 : f32 to vector<2x32xf32>
    %336 = arith.addf %335, %334 : vector<2x32xf32>
    %337 = arith.divf %335, %336 : vector<2x32xf32>
    %338 = arith.mulf %331, %299 : vector<2x32xf32>
    %339 = arith.mulf %326, %332 : vector<2x32xf32>
    %340 = arith.addf %338, %339 : vector<2x32xf32>
    %341 = math.tanh %340 : vector<2x32xf32>
    %342 = arith.mulf %337, %341 : vector<2x32xf32>
    %343 = vector.extract_strided_slice %24 {offsets = [7, 0], sizes = [1, 32], strides = [1, 1]} : vector<16x32xf32> to vector<1x32xf32>
    %344 = vector.extract_strided_slice %24 {offsets = [15, 0], sizes = [1, 32], strides = [1, 1]} : vector<16x32xf32> to vector<1x32xf32>
    %345 = tpu.concatenate %343, %344 in 0 : vector<1x32xf32>, vector<1x32xf32> -> vector<2x32xf32>
    %cst_96 = arith.constant dense<0.000000e+00> : vector<2x32xf32>
    %346 = tpu.matmul %342, %47, %cst_96 {dimension_numbers = #tpu.dot_dimension_numbers<[1], [0], [0], [1], [0, 0, 1, 1], [], []>} : vector<2x32xf32>, vector<32x32xf32>, vector<2x32xf32> -> vector<2x32xf32>
    %347 = arith.addf %345, %346 : vector<2x32xf32>
    %348 = vector.extract_strided_slice %31 {offsets = [7, 0], sizes = [1, 32], strides = [1, 1]} : vector<16x32xf32> to vector<1x32xf32>
    %349 = vector.extract_strided_slice %31 {offsets = [15, 0], sizes = [1, 32], strides = [1, 1]} : vector<16x32xf32> to vector<1x32xf32>
    %350 = tpu.concatenate %348, %349 in 0 : vector<1x32xf32>, vector<1x32xf32> -> vector<2x32xf32>
    %cst_97 = arith.constant dense<0.000000e+00> : vector<2x32xf32>
    %351 = tpu.matmul %342, %49, %cst_97 {dimension_numbers = #tpu.dot_dimension_numbers<[1], [0], [0], [1], [0, 0, 1, 1], [], []>} : vector<2x32xf32>, vector<32x32xf32>, vector<2x32xf32> -> vector<2x32xf32>
    %352 = arith.addf %350, %351 : vector<2x32xf32>
    %353 = vector.extract_strided_slice %38 {offsets = [7, 0], sizes = [1, 32], strides = [1, 1]} : vector<16x32xf32> to vector<1x32xf32>
    %354 = vector.extract_strided_slice %38 {offsets = [15, 0], sizes = [1, 32], strides = [1, 1]} : vector<16x32xf32> to vector<1x32xf32>
    %355 = tpu.concatenate %353, %354 in 0 : vector<1x32xf32>, vector<1x32xf32> -> vector<2x32xf32>
    %cst_98 = arith.constant dense<0.000000e+00> : vector<2x32xf32>
    %356 = tpu.matmul %342, %51, %cst_98 {dimension_numbers = #tpu.dot_dimension_numbers<[1], [0], [0], [1], [0, 0, 1, 1], [], []>} : vector<2x32xf32>, vector<32x32xf32>, vector<2x32xf32> -> vector<2x32xf32>
    %357 = arith.addf %355, %356 : vector<2x32xf32>
    %358 = vector.extract_strided_slice %45 {offsets = [7, 0], sizes = [1, 32], strides = [1, 1]} : vector<16x32xf32> to vector<1x32xf32>
    %359 = vector.extract_strided_slice %45 {offsets = [15, 0], sizes = [1, 32], strides = [1, 1]} : vector<16x32xf32> to vector<1x32xf32>
    %360 = tpu.concatenate %358, %359 in 0 : vector<1x32xf32>, vector<1x32xf32> -> vector<2x32xf32>
    %cst_99 = arith.constant dense<0.000000e+00> : vector<2x32xf32>
    %361 = tpu.matmul %342, %53, %cst_99 {dimension_numbers = #tpu.dot_dimension_numbers<[1], [0], [0], [1], [0, 0, 1, 1], [], []>} : vector<2x32xf32>, vector<32x32xf32>, vector<2x32xf32> -> vector<2x32xf32>
    %362 = arith.addf %360, %361 : vector<2x32xf32>
    %363 = arith.negf %347 : vector<2x32xf32>
    %364 = math.exp %363 : vector<2x32xf32>
    %cst_100 = arith.constant 1.000000e+00 : f32
    %365 = vector.broadcast %cst_100 : f32 to vector<2x32xf32>
    %366 = arith.addf %365, %364 : vector<2x32xf32>
    %367 = arith.divf %365, %366 : vector<2x32xf32>
    %368 = arith.negf %352 : vector<2x32xf32>
    %369 = math.exp %368 : vector<2x32xf32>
    %cst_101 = arith.constant 1.000000e+00 : f32
    %370 = vector.broadcast %cst_101 : f32 to vector<2x32xf32>
    %371 = arith.addf %370, %369 : vector<2x32xf32>
    %372 = arith.divf %370, %371 : vector<2x32xf32>
    %373 = math.tanh %357 : vector<2x32xf32>
    %374 = arith.negf %362 : vector<2x32xf32>
    %375 = math.exp %374 : vector<2x32xf32>
    %cst_102 = arith.constant 1.000000e+00 : f32
    %376 = vector.broadcast %cst_102 : f32 to vector<2x32xf32>
    %377 = arith.addf %376, %375 : vector<2x32xf32>
    %378 = arith.divf %376, %377 : vector<2x32xf32>
    %379 = arith.mulf %372, %340 : vector<2x32xf32>
    %380 = arith.mulf %367, %373 : vector<2x32xf32>
    %381 = arith.addf %379, %380 : vector<2x32xf32>
    %382 = math.tanh %381 : vector<2x32xf32>
    %383 = arith.mulf %378, %382 : vector<2x32xf32>
    %c0_103 = arith.constant 0 : index
    %c0_104 = arith.constant 0 : index
    %384 = vector.load %arg10[%c0_103, %c0_104] : memref<2x32xf32, #tpu.memory_space<vmem>>, vector<2x32xf32>
    tpu.vector_store %arg10[%c0_103, %c0_104], %383 {strides = array<i32>} : memref<2x32xf32, #tpu.memory_space<vmem>>, vector<2x32xf32>,
    %c0_105 = arith.constant 0 : index
    %c0_106 = arith.constant 0 : index
    %385 = vector.load %arg6[%c0_105, %c0_106] : memref<32x32xf32, #tpu.memory_space<vmem>>, vector<32x32xf32>
    %cst_107 = arith.constant dense<0.000000e+00> : vector<2x32xf32>
    %386 = tpu.matmul %383, %385, %cst_107 {dimension_numbers = #tpu.dot_dimension_numbers<[1], [0], [0], [1], [0, 0, 1, 1], [], []>} : vector<2x32xf32>, vector<32x32xf32>, vector<2x32xf32> -> vector<2x32xf32>
    %c0_108 = arith.constant 0 : index
    %c0_109 = arith.constant 0 : index
    %387 = vector.load %arg8[%c0_108, %c0_109] : memref<1x32xf32, #tpu.memory_space<vmem>>, vector<1x32xf32>
    %388 = vector.broadcast %387 : vector<1x32xf32> to vector<2x32xf32>
    %389 = arith.addf %386, %388 : vector<2x32xf32>
    %c0_110 = arith.constant 0 : index
    %c0_111 = arith.constant 0 : index
    %390 = vector.load %arg7[%c0_110, %c0_111] : memref<32x32xf32, #tpu.memory_space<vmem>>, vector<32x32xf32>
    %cst_112 = arith.constant 0.000000e+00 : f32
    %391 = vector.broadcast %cst_112 : f32 to vector<2x32xf32>
    %cst_113 = arith.constant dense<0.000000e+00> : vector<2x32xf32>
    %392 = tpu.matmul %391, %390, %cst_113 {dimension_numbers = #tpu.dot_dimension_numbers<[1], [0], [0], [1], [0, 0, 1, 1], [], []>} : vector<2x32xf32>, vector<32x32xf32>, vector<2x32xf32> -> vector<2x32xf32>
    %393 = arith.addf %389, %392 : vector<2x32xf32>
    %cst_114 = arith.constant 0.000000e+00 : f32
    %394 = vector.broadcast %cst_114 : f32 to vector<2x32xf32>
    %395 = arith.maximumf %393, %394 : vector<2x32xf32>
    %cst_115 = arith.constant dense<0.000000e+00> : vector<2x32xf32>
    %396 = tpu.matmul %395, %390, %cst_115 {dimension_numbers = #tpu.dot_dimension_numbers<[1], [0], [0], [1], [0, 0, 1, 1], [], []>} : vector<2x32xf32>, vector<32x32xf32>, vector<2x32xf32> -> vector<2x32xf32>
    %397 = arith.addf %389, %396 : vector<2x32xf32>
    %cst_116 = arith.constant 0.000000e+00 : f32
    %398 = vector.broadcast %cst_116 : f32 to vector<2x32xf32>
    %399 = arith.maximumf %397, %398 : vector<2x32xf32>
    %cst_117 = arith.constant dense<0.000000e+00> : vector<2x32xf32>
    %400 = tpu.matmul %399, %390, %cst_117 {dimension_numbers = #tpu.dot_dimension_numbers<[1], [0], [0], [1], [0, 0, 1, 1], [], []>} : vector<2x32xf32>, vector<32x32xf32>, vector<2x32xf32> -> vector<2x32xf32>
    %401 = arith.addf %389, %400 : vector<2x32xf32>
    %cst_118 = arith.constant 0.000000e+00 : f32
    %402 = vector.broadcast %cst_118 : f32 to vector<2x32xf32>
    %403 = arith.maximumf %401, %402 : vector<2x32xf32>
    %cst_119 = arith.constant dense<0.000000e+00> : vector<2x32xf32>
    %404 = tpu.matmul %403, %390, %cst_119 {dimension_numbers = #tpu.dot_dimension_numbers<[1], [0], [0], [1], [0, 0, 1, 1], [], []>} : vector<2x32xf32>, vector<32x32xf32>, vector<2x32xf32> -> vector<2x32xf32>
    %405 = arith.addf %389, %404 : vector<2x32xf32>
    %cst_120 = arith.constant 0.000000e+00 : f32
    %406 = vector.broadcast %cst_120 : f32 to vector<2x32xf32>
    %407 = arith.maximumf %405, %406 : vector<2x32xf32>
    %408 = vector.extract_strided_slice %17 {offsets = [0, 0], sizes = [8, 32], strides = [1, 1]} : vector<16x32xf32> to vector<8x32xf32>
    %409 = vector.extract_strided_slice %395 {offsets = [0, 0], sizes = [1, 32], strides = [1, 1]} : vector<2x32xf32> to vector<1x32xf32>
    %410 = vector.extract_strided_slice %399 {offsets = [0, 0], sizes = [1, 32], strides = [1, 1]} : vector<2x32xf32> to vector<1x32xf32>
    %411 = vector.extract_strided_slice %403 {offsets = [0, 0], sizes = [1, 32], strides = [1, 1]} : vector<2x32xf32> to vector<1x32xf32>
    %412 = vector.extract_strided_slice %407 {offsets = [0, 0], sizes = [1, 32], strides = [1, 1]} : vector<2x32xf32> to vector<1x32xf32>
    %413 = tpu.concatenate %409, %410, %411, %412 in 0 : vector<1x32xf32>, vector<1x32xf32>, vector<1x32xf32>, vector<1x32xf32> -> vector<4x32xf32>
    %414 = tpu.transpose %408, [1, 0] : vector<8x32xf32> -> vector<32x8xf32>
    %cst_121 = arith.constant dense<0.000000e+00> : vector<4x8xf32>
    %415 = tpu.matmul %413, %414, %cst_121 {dimension_numbers = #tpu.dot_dimension_numbers<[1], [0], [0], [1], [0, 0, 1, 1], [], []>} : vector<4x32xf32>, vector<32x8xf32>, vector<4x8xf32> -> vector<4x8xf32>
    %cst_122 = arith.constant dense<0xFF800000> : vector<4xf32>
    %416 = vector.multi_reduction <maximumf>, %415, %cst_122 [1] : vector<4x8xf32> to vector<4xf32>
    %417 = vector.shape_cast %416 : vector<4xf32> to vector<4x1xf32>
    %418 = vector.broadcast %417 : vector<4x1xf32> to vector<4x8xf32>
    %419 = arith.subf %415, %418 : vector<4x8xf32>
    %420 = math.exp %419 : vector<4x8xf32>
    %cst_123 = arith.constant dense<0.000000e+00> : vector<4xf32>
    %421 = vector.multi_reduction <add>, %420, %cst_123 [1] : vector<4x8xf32> to vector<4xf32>
    %422 = vector.shape_cast %421 : vector<4xf32> to vector<4x1xf32>
    %423 = vector.broadcast %422 : vector<4x1xf32> to vector<4x8xf32>
    %424 = arith.divf %420, %423 : vector<4x8xf32>
    %cst_124 = arith.constant dense<0.000000e+00> : vector<4x32xf32>
    %425 = tpu.matmul %424, %408, %cst_124 {dimension_numbers = #tpu.dot_dimension_numbers<[1], [0], [0], [1], [0, 0, 1, 1], [], []>} : vector<4x8xf32>, vector<8x32xf32>, vector<4x32xf32> -> vector<4x32xf32>
    %c0_125 = arith.constant 0 : index
    %c0_126 = arith.constant 0 : index
    %c0_127 = arith.constant 0 : index
    %426 = vector.load %arg9[%c0_125, %c0_126, %c0_127] : memref<2x4x32xf32, #tpu.memory_space<vmem>>, vector<1x4x32xf32>
    %427 = vector.shape_cast %426 : vector<1x4x32xf32> to vector<4x32xf32>
    %428 = vector.shape_cast %425 : vector<4x32xf32> to vector<1x4x32xf32>
    tpu.vector_store %arg9[%c0_125, %c0_126, %c0_127], %428 {strides = array<i32>} : memref<2x4x32xf32, #tpu.memory_space<vmem>>, vector<1x4x32xf32>,
    %429 = vector.extract_strided_slice %17 {offsets = [8, 0], sizes = [8, 32], strides = [1, 1]} : vector<16x32xf32> to vector<8x32xf32>
    %430 = vector.extract_strided_slice %395 {offsets = [1, 0], sizes = [1, 32], strides = [1, 1]} : vector<2x32xf32> to vector<1x32xf32>
    %431 = vector.extract_strided_slice %399 {offsets = [1, 0], sizes = [1, 32], strides = [1, 1]} : vector<2x32xf32> to vector<1x32xf32>
    %432 = vector.extract_strided_slice %403 {offsets = [1, 0], sizes = [1, 32], strides = [1, 1]} : vector<2x32xf32> to vector<1x32xf32>
    %433 = vector.extract_strided_slice %407 {offsets = [1, 0], sizes = [1, 32], strides = [1, 1]} : vector<2x32xf32> to vector<1x32xf32>
    %434 = tpu.concatenate %430, %431, %432, %433 in 0 : vector<1x32xf32>, vector<1x32xf32>, vector<1x32xf32>, vector<1x32xf32> -> vector<4x32xf32>
    %435 = tpu.transpose %429, [1, 0] : vector<8x32xf32> -> vector<32x8xf32>
    %cst_128 = arith.constant dense<0.000000e+00> : vector<4x8xf32>
    %436 = tpu.matmul %434, %435, %cst_128 {dimension_numbers = #tpu.dot_dimension_numbers<[1], [0], [0], [1], [0, 0, 1, 1], [], []>} : vector<4x32xf32>, vector<32x8xf32>, vector<4x8xf32> -> vector<4x8xf32>
    %cst_129 = arith.constant dense<0xFF800000> : vector<4xf32>
    %437 = vector.multi_reduction <maximumf>, %436, %cst_129 [1] : vector<4x8xf32> to vector<4xf32>
    %438 = vector.shape_cast %437 : vector<4xf32> to vector<4x1xf32>
    %439 = vector.broadcast %438 : vector<4x1xf32> to vector<4x8xf32>
    %440 = arith.subf %436, %439 : vector<4x8xf32>
    %441 = math.exp %440 : vector<4x8xf32>
    %cst_130 = arith.constant dense<0.000000e+00> : vector<4xf32>
    %442 = vector.multi_reduction <add>, %441, %cst_130 [1] : vector<4x8xf32> to vector<4xf32>
    %443 = vector.shape_cast %442 : vector<4xf32> to vector<4x1xf32>
    %444 = vector.broadcast %443 : vector<4x1xf32> to vector<4x8xf32>
    %445 = arith.divf %441, %444 : vector<4x8xf32>
    %cst_131 = arith.constant dense<0.000000e+00> : vector<4x32xf32>
    %446 = tpu.matmul %445, %429, %cst_131 {dimension_numbers = #tpu.dot_dimension_numbers<[1], [0], [0], [1], [0, 0, 1, 1], [], []>} : vector<4x8xf32>, vector<8x32xf32>, vector<4x32xf32> -> vector<4x32xf32>
    %c1_132 = arith.constant 1 : index
    %c0_133 = arith.constant 0 : index
    %c0_134 = arith.constant 0 : index
    %447 = vector.load %arg9[%c1_132, %c0_133, %c0_134] : memref<2x4x32xf32, #tpu.memory_space<vmem>>, vector<1x4x32xf32>
    %448 = vector.shape_cast %447 : vector<1x4x32xf32> to vector<4x32xf32>
    %449 = vector.shape_cast %446 : vector<4x32xf32> to vector<1x4x32xf32>
    tpu.vector_store %arg9[%c1_132, %c0_133, %c0_134], %449 {strides = array<i32>} : memref<2x4x32xf32, #tpu.memory_space<vmem>>, vector<1x4x32xf32>,
    return
  }
}

</mosaic_0001>

<bundles_post_ra>
// kernel: instructions_model_forward.1
= control target key start
LH: loop header
LB: loop body
LE: loop exit
PB: predicated region body
PF: predicated region fallthrough
CT: control target
= control target key end

     0   :  { %16 = vsyncpa [#allocation3], 0  ;;  %vm42_vm0 = vcmask 261120   ;;  %s6102_s0 = inlined_call_operand.vmem [shape: f32[16,32], index: 0, kind: input, shape index: {}]   ;;  %s6103_s1 = inlined_call_operand.vmem [shape: f32[32,11], index: 1, kind: input, shape index: {}]   ;;  %s6104_s2 = inlined_call_operand.vmem [shape: f32[11,32], index: 2, kind: input, shape index: {}]   ;;  %s6105_s3 = inlined_call_operand.vmem [shape: f32[4,32,32], index: 3, kind: input, shape index: {}]   ;;  %s6106_s4 = inlined_call_operand.vmem [shape: f32[4,32,32], index: 4, kind: input, shape index: {}]   ;;  %s6107_s5 = inlined_call_operand.vmem [shape: f32[4,1,32], index: 5, kind: input, shape index: {}]   ;;  %s6108_s6 = inlined_call_operand.vmem [shape: f32[32,32], index: 6, kind: input, shape index: {}]   ;;  %s6109_s7 = inlined_call_operand.vmem [shape: f32[32,32], index: 7, kind: input, shape index: {}]   ;;  %s6110_s8 = inlined_call_operand.vmem [shape: f32[1,32], index: 8, kind: input, shape index: {}]   ;;  %s6111_s9 = inlined_call_operand.hbm [shape: f32[2,4,32], index: 9, kind: output, shape index: {0}]   ;;  %s6112_s10 = inlined_call_operand.hbm [shape: f32[2,32], index: 10, kind: output, shape index: {1}]  }
   0x1   :  { %v38_v0 = vld [vmem:[%s6103_s1] sm:$0xff]  ;;  %v39_v1 = vld [vmem:[%s6103_s1 + $0x8] sm:$0xff]  ;;  %v40_v2 = vld [vmem:[%s6103_s1 + $0x10] sm:$0xff] }
   0x2   :  { %v4842_v3 = vpack.c.bf16 %v39_v1, %v38_v0  ;;  %v41_v4 = vld [vmem:[%s6103_s1 + $0x18] sm:$0xff]  ;;  %v5392_v5 = vld [vmem:[%s6102_s0] sm:$0xff] }
   0x3   :  { %v4846_v6 = vpack.c.bf16 %v41_v4, %v40_v2  ;;  %4361 = vmatprep.mubr.msk.f32.mxu0 %vm42_vm0, %v5392_v5 }
   0x4   :  { %17 = vsyncpa [#allocation5], 0  ;;  %4843 = vmatprep.subr.bf16.mxu0 %v4842_v3  ;;  %v5399_v7 = vld [vmem:[%s6102_s0 + $0x8] sm:$0xff]  ;;  %vm124_vm1 = vcmask 89088   ;;  %v159_v22 = vld [vmem:[%s6104_s2] sm:$0xff]  ;;  %vm165_vm2 = vcmask 1042432  }
   0x5   :  { %4845 = vmatpush3.bf16.msra.mxu0 %v4842_v3  ;;  %v160_v23 = vld [vmem:[%s6104_s2 + $0x8] sm:$0x7]  ;;  %v5313_v24 = vmov 10   ;;  %vm5314_vm3 = vmmov 1   ;;  %v246_v32 = vld [vmem:[%s6105_s3] sm:$0xff]  ;;  %v248_v38 = vld [vmem:[%s6105_s3 + $0x10] sm:$0xff] }
   0x6   :  { %4847 = vmatprep.subr.bf16.mxu0 %v4846_v6  ;;  %5119 = vset.pattern.permute.xlu0 %v5313_v24  ;;  %v4850_v25 = vpack.c.bf16 %v160_v23, %v159_v22  ;;  %vm4851_vm4 = vmpackc.low %vm165_vm2, %vm5314_vm3  ;;  %v247_v33 = vld [vmem:[%s6105_s3 + $0x8] sm:$0xff]  ;;  %v4027_v34 = vld [vmem:[%s6105_s3 + $0x20] sm:$0xff]  ;;  %vm5316_vm5 = vmmov 0   ;;  %vm624_vm6 = vcmask 1040384   ;;  %vm3262_vm7 = vcmask 254976  }
   0x7   :  { %5120 = vset.pattern.permute.xlu1 %v5313_v24  ;;  %v4856_v35 = vpack.c.bf16 %v247_v33, %v246_v32  ;;  %v4028_v36 = vld [vmem:[%s6105_s3 + $0x28] sm:$0xff]  ;;  %v249_v39 = vld [vmem:[%s6105_s3 + $0x18] sm:$0xff]  ;;  %v4029_v40 = vld [vmem:[%s6105_s3 + $0x30] sm:$0xff]  ;;  %vm3657_vm8 = vcmask 1041408   ;;  %vm3733_vm9 = vcmask 60416   ;;  %vm3745_vm10 = vcmask 64512  }
   0x8   :  { %4852 = vmatprep.subr.msk.bf16.mxu1 %vm4851_vm4, %v4850_v25  ;;  %v4864_v37 = vpack.c.bf16 %v4028_v36, %v4027_v34  ;;  %v4860_v41 = vpack.c.bf16 %v249_v39, %v248_v38  ;;  %v4030_v42 = vld [vmem:[%s6105_s3 + $0x38] sm:$0xff]  ;;  %v4035_v44 = vld [vmem:[%s6105_s3 + $0x40] sm:$0xff]  ;;  %v4036_v45 = vld [vmem:[%s6105_s3 + $0x48] sm:$0xff] }
   0x9   :  { %4849 = vmatpush3.bf16.msra.mxu0 %v4846_v6  ;;  %4855 = vmatpush3.bf16.msk.msra.mxu1 %vm4851_vm4, %v4850_v25  ;;  %v4868_v43 = vpack.c.bf16 %v4030_v42, %v4029_v40  ;;  %v4043_v46 = vld [vmem:[%s6105_s3 + $0x60] sm:$0xff]  ;;  %v4872_v47 = vpack.c.bf16 %v4036_v45, %v4035_v44  ;;  %v4044_v48 = vld [vmem:[%s6105_s3 + $0x68] sm:$0xff]  ;;  %v4037_v54 = vld [vmem:[%s6105_s3 + $0x50] sm:$0xff] }
   0xa   :  { %4857 = vmatprep.subr.bf16.mxu1 %v4856_v35  ;;  %4865 = vmatprep.subr.bf16.mxu0 %v4864_v37  ;;  %v4880_v49 = vpack.c.bf16 %v4044_v48, %v4043_v46  ;;  %v4038_v57 = vld [vmem:[%s6105_s3 + $0x58] sm:$0xff]  ;;  %v4045_v58 = vld [vmem:[%s6105_s3 + $0x70] sm:$0xff]  ;;  %v602_v0 = vld [vmem:[%s6106_s4] sm:$0xff] }
   0xb   :  { %v4046_v59 = vld [vmem:[%s6105_s3 + $0x78] sm:$0xff]  ;;  %v4876_v62 = vpack.c.bf16 %v4038_v57, %v4037_v54  ;;  %v603_v1 = vld [vmem:[%s6106_s4 + $0x8] sm:$0xff]  ;;  %v4051_v2 = vld [vmem:[%s6106_s4 + $0x20] sm:$0xff] }
   0xc   :  { %4362 = vmatmul.mubr.msk.f32.vlgmr.msra.gmra.mrb[0].mxu0 %vm42_vm0, %v5399_v7  ;;  %v4884_v63 = vpack.c.bf16 %v4046_v59, %v4045_v58  ;;  %v4052_v3 = vld [vmem:[%s6106_s4 + $0x28] sm:$0xff]  ;;  %v5494_v4 = vpack.c.bf16 %v603_v1, %v602_v0  ;;  %v604_v6 = vld [vmem:[%s6106_s4 + $0x10] sm:$0xff]  ;;  %v4062_v23 = vld [vmem:[%s6106_s4 + $0x78] sm:$0xff] }
   0xd   :  { %4867 = vmatpush3.bf16.msra.mxu0 %v4864_v37  ;;  %v4061_v22 = vld [vmem:[%s6106_s4 + $0x70] sm:$0xff]  ;;  %v4040_v48 = vld [vmem:[%s6107_s5 + $0x2] ss:$0 sm:$0xff] }
   0xe   :  { %4869 = vmatprep.subr.bf16.mxu0 %v4868_v43  ;;  %v5566_v25 = vpack.c.bf16 %v4062_v23, %v4061_v22 }
  0x11   :  { %4871 = vmatpush3.bf16.msra.mxu0 %v4868_v43 }
  0x12   :  { %4881 = vmatprep.subr.bf16.mxu0 %v4880_v49 }
  0xdf   :  { %v4363_v8 = vpop.f32.mrb[0].mxu0 }
  0xe0   :  { %v115_v9 = vpop.f32.mrb[1].mxu0  ;;  %v128_v11 = vsel %vm124_vm1, %v4363_v8, -inf }
  0xe1   :  { %v125_v10 = vsel %vm124_vm1, %v115_v9, -inf }
  0xe2   :  { %126 = vmax.xlane.f32.xlu0 %v125_v10  ;;  %v4054_v10 = vld [vmem:[%s6106_s4 + $0x38] sm:$0xff] }
  0xe6   :  { %129 = vmax.xlane.f32.xlu0 %v128_v11 }
 0x16f   :  { %v127_v12 = vpop.xlane.xlu0 %126 }
 0x170   :  { %v131_v13 = vsub.f32 %v115_v9, %v127_v12  ;;  %v4053_v9 = vld [vmem:[%s6106_s4 + $0x30] sm:$0xff] }
 0x171   :  { %v5520_v12 = vpack.c.bf16 %v4054_v10, %v4053_v9 }
 0x172   :  { %v133_v14 = vmul.f32 1.442695, %v131_v13  ;;  %v4055_v13 = vld [vmem:[%s6106_s4 + $0x40] sm:$0xff] }
 0x173   :  { %v130_v15 = vpop.xlane.xlu0 %129 }
 0x174   :  { %5121 = vpow2.f32 %v133_v14  ;;  %v132_v16 = vsub.f32 %v4363_v8, %v130_v15  ;;  %v605_v8 = vld [vmem:[%s6106_s4 + $0x18] sm:$0xff]  ;;  %v4056_v14 = vld [vmem:[%s6106_s4 + $0x48] sm:$0xff]  ;;  %v4059_v15 = vld [vmem:[%s6106_s4 + $0x60] sm:$0xff] }
 0x175   :  { %v5518_v11 = vpack.c.bf16 %v605_v8, %v604_v6 }
 0x176   :  { %v135_v17 = vmul.f32 1.442695, %v132_v16  ;;  %v4060_v16 = vld [vmem:[%s6106_s4 + $0x68] sm:$0xff] }
 0x178   :  { %5123 = vpow2.f32 %v135_v17  ;;  %v5317_v17 = vmov 0.0  }
 0x17e   :  { %v5122_v18 = vpop.eup %5121 }
 0x17f   :  { %v137_v19 = vsel %vm124_vm1, %v5122_v18, 0.0 }
 0x180   :  { %138 = vadd.xlane.f32.xlu1 %v137_v19  ;;  %v5544_v19 = vpack.c.bf16 %v4060_v16, %v4059_v15 }
 0x182   :  { %v5124_v20 = vpop.eup %5123 }
 0x183   :  { %v140_v21 = vsel %vm124_vm1, %v5124_v20, 0.0 }
 0x184   :  { %141 = vadd.xlane.f32.xlu1 %v140_v21  ;;  %v4058_v21 = vld [vmem:[%s6106_s4 + $0x58] sm:$0xff] }
 0x20d   :  { %v139_v26 = vpop.xlane.xlu1 %138 }
 0x20e   :  { %5125 = vrcp.f32 %v139_v26  ;;  %v4024_v26 = vld [vmem:[%s6107_s5] ss:$0 sm:$0xff] }
 0x211   :  { %v142_v27 = vpop.xlane.xlu1 %141 }
 0x212   :  { %5127 = vrcp.f32 %v142_v27  ;;  %v4032_v27 = vld [vmem:[%s6107_s5 + $0x1] ss:$0 sm:$0xff] }
 0x218   :  { %v5126_v28 = vpop.eup %5125 }
 0x219   :  { %v144_v29 = vmul.f32 %v5126_v28, %v5122_v18  ;;  %v5542_v18 = vpack.c.bf16 %v4056_v14, %v4055_v13 }
 0x21b   :  { %149 = vperm.xlu0 %5119, %v144_v29   ;;  %4368 = vmatprep.mubr.msk.f32.mxu1 %vm124_vm1, %v144_v29 }
 0x21c   :  { %v5128_v30 = vpop.eup %5127 }
 0x21d   :  { %v146_v31 = vmul.f32 %v5128_v30, %v5124_v20  ;;  %v4057_v20 = vld [vmem:[%s6106_s4 + $0x50] sm:$0xff] }
 0x21e   :  { %v5564_v24 = vpack.c.bf16 %v4058_v21, %v4057_v20 }
 0x21f   :  { %154 = vperm.xlu1 %5120, %v146_v31   ;;  %4369 = vmatmul.mubr.msk.f32.vlgmr.msra.gmra.mrb[0].mxu1 %vm124_vm1, %v146_v31 }
 0x220   :  { %4859 = vmatpush3.bf16.msra.mxu1 %v4856_v35 }
 0x221   :  { %4861 = vmatprep.subr.bf16.mxu1 %v4860_v41 }
 0x224   :  { %4863 = vmatpush3.bf16.msra.mxu1 %v4860_v41 }
 0x225   :  { %4873 = vmatprep.subr.bf16.mxu1 %v4872_v47 }
 0x29a   :  { %v150_v50 = vpop.permute.xlu0 %149 }
 0x29b   :  { %v157_v52 = vmul.f32 %v150_v50, %v5392_v5  ;;  %v5496_v5 = vpack.c.bf16 %v4052_v3, %v4051_v2 }
 0x29e   :  { %v155_v51 = vpop.permute.xlu1 %154 }
 0x29f   :  { %v158_v55 = vmul.f32 %v155_v51, %v5399_v7  ;;  %v5315_v7 = vmov 0.0|0.0  }
 0x2f2   :  { %v4370_v53 = vpop.f32.mrb[0].mxu1 }
 0x2f3   :  { %v235_v56 = vpop.f32.mrb[1].mxu1  ;;  %v5468_v61 = vadd.f32 %v4370_v53, %v158_v55 }
 0x2f4   :  { %v5466_v60 = vadd.f32 %v235_v56, %v157_v52 }
 0x2f6   :  { %4379 = vmatprep.mubr.msk.f32.mxu1 %vm42_vm0, %v5466_v60  ;;  %4390 = vmatprep.mubr.msk.f32.mxu0 %vm42_vm0, %v5466_v60 }
 0x2f7   :  { %4380 = vmatmul.mubr.msk.f32.vlgmr.msra.gmra.mrb[2].mxu1 %vm42_vm0, %v5468_v61  ;;  %4391 = vmatmul.mubr.msk.f32.vlgmr.msra.gmra.mrb[2].mxu0 %vm42_vm0, %v5468_v61 }
 0x2f8   :  { %4875 = vmatpush3.bf16.msra.mxu1 %v4872_v47  ;;  %4883 = vmatpush3.bf16.msra.mxu0 %v4880_v49  ;;  %v4048_v49 = vld [vmem:[%s6107_s5 + $0x3] ss:$0 sm:$0xff] }
 0x2f9   :  { %4401 = vmatprep.mubr.msk.f32.mxu1 %vm42_vm0, %v5466_v60  ;;  %4412 = vmatprep.mubr.msk.f32.mxu0 %vm42_vm0, %v5466_v60 }
 0x2fa   :  { %4877 = vmatprep.subr.bf16.mxu1 %v4876_v62  ;;  %4885 = vmatprep.subr.bf16.mxu0 %v4884_v63 }
 0x2fc   :  { %4879 = vmatpush3.bf16.msra.mxu1 %v4876_v62  ;;  %4887 = vmatpush3.bf16.msra.mxu0 %v4884_v63 }
 0x2fd   :  { %4888 = vmatprep.subr.bf16.mxu1 %v5315_v7  ;;  %4894 = vmatprep.subr.bf16.mxu0 %v5315_v7 }
 0x2ff   :  { %4402 = vmatmul.mubr.msk.f32.vlgmr.msra.gmra.mrb[4].mxu1 %vm42_vm0, %v5468_v61  ;;  %4413 = vmatmul.mubr.msk.f32.vlgmr.msra.gmra.mrb[4].mxu0 %vm42_vm0, %v5468_v61 }
 0x300   :  { %4890 = vmatpush3.bf16.msra.mxu1 %v5494_v4  ;;  %4896 = vmatpush3.bf16.msra.mxu0 %v5496_v5 }
 0x301   :  { %4891 = vmatprep.subr.bf16.mxu1 %v5315_v7  ;;  %4897 = vmatprep.subr.bf16.mxu0 %v5315_v7 }
 0x302   :  { %4423 = vmatprep.mubr.msk.f32.mxu1 %vm5316_vm5, %v5317_v17  ;;  %4434 = vmatprep.mubr.msk.f32.mxu0 %vm5316_vm5, %v5317_v17 }
 0x304   :  { %4893 = vmatpush3.bf16.msra.mxu1 %v5518_v11  ;;  %4899 = vmatpush3.bf16.msra.mxu0 %v5520_v12 }
 0x305   :  { %4900 = vmatprep.subr.bf16.mxu1 %v5315_v7  ;;  %4906 = vmatprep.subr.bf16.mxu0 %v5315_v7 }
 0x307   :  { %4424 = vmatmul.mubr.f32.vlgmr.msra.gmra.mrb[6].mxu1 %v5317_v17  ;;  %4435 = vmatmul.mubr.f32.vlgmr.msra.gmra.mrb[6].mxu0 %v5317_v17 }
 0x308   :  { %4902 = vmatpush3.bf16.msra.mxu1 %v5542_v18  ;;  %4908 = vmatpush3.bf16.msra.mxu0 %v5544_v19 }
 0x309   :  { %4903 = vmatprep.subr.bf16.mxu1 %v5315_v7  ;;  %4909 = vmatprep.subr.bf16.mxu0 %v5315_v7 }
 0x30a   :  { %4445 = vmatprep.mubr.msk.f32.mxu1 %vm5316_vm5, %v5317_v17  ;;  %4456 = vmatprep.mubr.msk.f32.mxu0 %vm5316_vm5, %v5317_v17 }
 0x30c   :  { %4905 = vmatpush3.bf16.msra.mxu1 %v5564_v24  ;;  %4911 = vmatpush3.bf16.msra.mxu0 %v5566_v25 }
 0x30d   :  { %4912 = vmatprep.subr.bf16.mxu1 %v5315_v7  ;;  %4918 = vmatprep.subr.bf16.mxu0 %v5315_v7 }
 0x30f   :  { %4446 = vmatmul.mubr.f32.vlgmr.msra.gmra.mrb[8].mxu1 %v5317_v17  ;;  %4457 = vmatmul.mubr.f32.vlgmr.msra.gmra.mrb[8].mxu0 %v5317_v17 }
 0x310   :  { %4914 = vmatpush3.bf16.msra.mxu1 %v5494_v4  ;;  %4920 = vmatpush3.bf16.msra.mxu0 %v5496_v5 }
 0x311   :  { %4915 = vmatprep.subr.bf16.mxu1 %v5315_v7  ;;  %4921 = vmatprep.subr.bf16.mxu0 %v5315_v7 }
 0x312   :  { %4467 = vmatprep.mubr.msk.f32.mxu1 %vm5316_vm5, %v5317_v17  ;;  %4478 = vmatprep.mubr.msk.f32.mxu0 %vm5316_vm5, %v5317_v17 }
 0x314   :  { %4917 = vmatpush3.bf16.msra.mxu1 %v5518_v11  ;;  %4923 = vmatpush3.bf16.msra.mxu0 %v5520_v12 }
 0x315   :  { %4924 = vmatprep.subr.bf16.mxu1 %v5315_v7  ;;  %4930 = vmatprep.subr.bf16.mxu0 %v5315_v7 }
 0x3ca   :  { %v4381_v28 = vpop.f32.mrb[2].mxu1  ;;  %v4392_v29 = vpop.f32.mrb[2].mxu0 }
 0x3cb   :  { %v5598_v30 = vadd.f32 %v4381_v28, %v4024_v26  ;;  %v5600_v31 = vadd.f32 %v4392_v29, %v4032_v27  ;;  %v329_v32 = vpop.f32.mrb[3].mxu1  ;;  %v417_v33 = vpop.f32.mrb[3].mxu0 }
 0x3cc   :  { %v5602_v34 = vadd.f32 %v4024_v26, %v329_v32  ;;  %v5604_v35 = vadd.f32 %v4032_v27, %v417_v33 }
 0x3cd   :  { %v622_v36 = vrot.slane %v5598_v30, 7  ;;  %v701_v37 = vrot.slane %v5600_v31, 7  ;;  %v1278_v38 = vrot.slane %v5598_v30, 1  ;;  %v1357_v39 = vrot.slane %v5600_v31, 1 }
 0x3ce   :  { %v950_v40 = vrot.slane %v5602_v34, 1  ;;  %v1028_v41 = vrot.slane %v5604_v35, 1  ;;  %v1276_v42 = vrot.slane %v5602_v34, 2  ;;  %v1355_v43 = vrot.slane %v5604_v35, 2 }
 0x3cf   :  { %v625_v44 = vsel %vm624_vm6, %v5602_v34, %v622_v36  ;;  %v703_v45 = vsel %vm624_vm6, %v5604_v35, %v701_v37  ;;  %v1607_v46 = vrot.slane %v5602_v34, 3  ;;  %v1609_v47 = vrot.slane %v5598_v30, 2 }
 0x3d0   :  { %v5628_v50 = vsel %vm624_vm6, %v950_v40, %v5598_v30  ;;  %v5632_v51 = vsel %vm624_vm6, %v1028_v41, %v5600_v31  ;;  %v5635_v52 = vsel %vm624_vm6, %v1276_v42, %v1278_v38  ;;  %v5638_v53 = vsel %vm624_vm6, %v1355_v43, %v1357_v39 }
 0x3d1   :  { %v5641_v54 = vsel %vm624_vm6, %v1607_v46, %v1609_v47  ;;  %v1686_v55 = vrot.slane %v5604_v35, 3  ;;  %v1688_v56 = vrot.slane %v5600_v31, 2  ;;  %v1938_v57 = vrot.slane %v5602_v34, 4 }
 0x3d2   :  { %v4403_v58 = vpop.f32.mrb[4].mxu1  ;;  %v4414_v59 = vpop.f32.mrb[4].mxu0  ;;  %v1940_v62 = vrot.slane %v5598_v30, 3  ;;  %v2017_v63 = vrot.slane %v5604_v35, 4  ;;  %v2019_v0 = vrot.slane %v5600_v31, 3  ;;  %v2269_v1 = vrot.slane %v5602_v34, 5 }
 0x3d3   :  { %v5650_v2 = vadd.f32 %v4403_v58, %v4040_v48  ;;  %v5652_v3 = vadd.f32 %v4414_v59, %v4048_v49  ;;  %v505_v6 = vpop.f32.mrb[5].mxu1  ;;  %v593_v8 = vpop.f32.mrb[5].mxu0  ;;  %v5655_v9 = vsel %vm624_vm6, %v1686_v55, %v1688_v56  ;;  %v2271_v10 = vrot.slane %v5598_v30, 4 }
 0x3d4   :  { %v5658_v13 = vadd.f32 %v4040_v48, %v505_v6  ;;  %v5660_v14 = vadd.f32 %v4048_v49, %v593_v8  ;;  %v5663_v15 = vsel %vm624_vm6, %v1938_v57, %v1940_v62  ;;  %v5666_v16 = vsel %vm624_vm6, %v2017_v63, %v2019_v0 }
 0x3d5   :  { %v776_v20 = vrot.slane %v5650_v2, 7  ;;  %v851_v21 = vrot.slane %v5652_v3, 7  ;;  %v1433_v22 = vrot.slane %v5650_v2, 1  ;;  %v1509_v23 = vrot.slane %v5652_v3, 1 }
 0x3d6   :  { %v1103_v26 = vrot.slane %v5658_v13, 1  ;;  %v1178_v27 = vrot.slane %v5660_v14, 1  ;;  %v1431_v28 = vrot.slane %v5658_v13, 2  ;;  %v1507_v29 = vrot.slane %v5660_v14, 2 }
 0x3d7   :  { %v778_v32 = vsel %vm624_vm6, %v5658_v13, %v776_v20  ;;  %v853_v33 = vsel %vm624_vm6, %v5660_v14, %v851_v21  ;;  %v1762_v36 = vrot.slane %v5658_v13, 3  ;;  %v1764_v37 = vrot.slane %v5650_v2, 2 }
 0x3d8   :  { %v5684_v38 = vsel %vm624_vm6, %v1103_v26, %v5650_v2  ;;  %v5688_v39 = vsel %vm624_vm6, %v1178_v27, %v5652_v3  ;;  %v5691_v40 = vsel %vm624_vm6, %v1431_v28, %v1433_v22  ;;  %v5694_v41 = vsel %vm624_vm6, %v1507_v29, %v1509_v23 }
 0x3d9   :  { %v5697_v42 = vsel %vm624_vm6, %v1762_v36, %v1764_v37  ;;  %v1838_v43 = vrot.slane %v5660_v14, 3  ;;  %v1840_v46 = vrot.slane %v5652_v3, 2  ;;  %v2093_v47 = vrot.slane %v5658_v13, 4 }
 0x3da   :  { %v695_v48 = vpop.f32.mrb[6].mxu1  ;;  %v770_v49 = vpop.f32.mrb[6].mxu0  ;;  %v2095_v55 = vrot.slane %v5650_v2, 3  ;;  %v2169_v56 = vrot.slane %v5660_v14, 4  ;;  %v2171_v57 = vrot.slane %v5652_v3, 3  ;;  %v5706_v58 = vsel %vm624_vm6, %v2269_v1, %v2271_v10 }
 0x3db   :  { %v699_v59 = vadd.f32 %v695_v48, %v625_v44  ;;  %v774_v62 = vadd.f32 %v770_v49, %v703_v45  ;;  %v4425_v63 = vpop.f32.mrb[7].mxu1  ;;  %v4436_v0 = vpop.f32.mrb[7].mxu0  ;;  %v5709_v6 = vsel %vm624_vm6, %v1838_v43, %v1840_v46  ;;  %v2348_v8 = vrot.slane %v5604_v35, 5 }
 0x3dc   :  { %v5713_v20 = vsel %vm624_vm6, %v2093_v47, %v2095_v55  ;;  %v5716_v21 = vsel %vm624_vm6, %v2169_v56, %v2171_v57  ;;  %v2350_v22 = vrot.slane %v5600_v31, 4  ;;  %v2424_v1 = vrot.slane %v5658_v13, 5 }
 0x3dd   :  { %v4063_v10 = vmul.f32 -1.442695, %v699_v59  ;;  %v4064_v44 = vmul.f32 -1.442695, %v774_v62  ;;  %v2426_v45 = vrot.slane %v5650_v2, 4  ;;  %v2500_v23 = vrot.slane %v5660_v14, 5 }
 0x3de   :  { %v5723_v26 = vsel %vm624_vm6, %v2348_v8, %v2350_v22  ;;  %v2502_v27 = vrot.slane %v5652_v3, 4  ;;  %v2600_v28 = vrot.slane %v5602_v34, 6  ;;  %v2602_v29 = vrot.slane %v5598_v30, 5 }
 0x3df   :  { %5129 = vpow2.f32 %v4063_v10  ;;  %v5729_v36 = vsel %vm624_vm6, %v2424_v1, %v2426_v45  ;;  %v2679_v37 = vrot.slane %v5604_v35, 6  ;;  %v2681_v43 = vrot.slane %v5600_v31, 5 }
 0x3e0   :  { %5131 = vpow2.f32 %v4064_v44  ;;  %v5734_v46 = vsel %vm624_vm6, %v2500_v23, %v2502_v27  ;;  %v5737_v47 = vsel %vm624_vm6, %v2600_v28, %v2602_v29  ;;  %v2755_v48 = vrot.slane %v5658_v13, 6 }
 0x3e1   :  { %v5741_v49 = vsel %vm624_vm6, %v2679_v37, %v2681_v43  ;;  %v2757_v55 = vrot.slane %v5650_v2, 5  ;;  %v2831_v56 = vrot.slane %v5660_v14, 6  ;;  %v2833_v57 = vrot.slane %v5652_v3, 5 }
 0x3e2   :  { %v845_v59 = vpop.f32.mrb[8].mxu1  ;;  %v920_v62 = vpop.f32.mrb[8].mxu0  ;;  %v2931_v63 = vrot.slane %v5602_v34, 7  ;;  %v2933_v0 = vrot.slane %v5598_v30, 6  ;;  %v3010_v8 = vrot.slane %v5604_v35, 7  ;;  %v3012_v22 = vrot.slane %v5600_v31, 6 }
 0x3e3   :  { %v849_v1 = vadd.f32 %v845_v59, %v778_v32  ;;  %v924_v10 = vadd.f32 %v920_v62, %v853_v33  ;;  %v4447_v44 = vpop.f32.mrb[9].mxu1  ;;  %v4458_v45 = vpop.f32.mrb[9].mxu0  ;;  %v5751_v23 = vsel %vm624_vm6, %v2755_v48, %v2757_v55  ;;  %v5754_v27 = vsel %vm624_vm6, %v2831_v56, %v2833_v57 }
 0x3e4   :  { %v5757_v28 = vsel %vm624_vm6, %v2931_v63, %v2933_v0  ;;  %v5760_v34 = vsel %vm624_vm6, %v3010_v8, %v3012_v22  ;;  %v3086_v30 = vrot.slane %v5658_v13, 7  ;;  %v3088_v31 = vrot.slane %v5650_v2, 6 }
 0x3e5   :  { %v3162_v35 = vrot.slane %v5660_v14, 7  ;;  %v3164_v32 = vrot.slane %v5652_v3, 6  ;;  %v4065_v33 = vmul.f32 -1.442695, %v924_v10 }
 0x3e6   :  { %v5767_v29 = vsel %vm624_vm6, %v3086_v30, %v3088_v31 }
 0x3e7   :  { %v5770_v37 = vsel %vm624_vm6, %v3162_v35, %v3164_v32  ;;  %5133 = vpow2.f32 %v4065_v33 }
 0x3e8   :  { %5135 = vtanh.f32 %v849_v1 }
 0x3e9   :  { %v5130_v43 = vpop.eup %5129 }
 0x3ea   :  { %v5132_v48 = vpop.eup %5131  ;;  %v928_v55 = vadd.f32 1.0, %v5130_v43 }
 0x3eb   :  { %v934_v56 = vadd.f32 1.0, %v5132_v48 }
 0x3ec   :  { %5137 = vrcp.f32 %v928_v55 }
 0x3ed   :  { %5139 = vrcp.f32 %v934_v56 }
 0x3f1   :  { %v5134_v2 = vpop.eup %5133 }
 0x3f2   :  { %v5136_v13 = vpop.eup %5135  ;;  %v941_v59 = vadd.f32 1.0, %v5134_v2 }
 0x3f4   :  { %5141 = vrcp.f32 %v941_v59 }
 0x3f6   :  { %v5138_v14 = vpop.eup %5137 }
 0x3f7   :  { %v5140_v57 = vpop.eup %5139  ;;  %v945_v3 = vmul.f32 %v5138_v14, %v5136_v13 }
 0x3f8   :  { %v944_v62 = vmul.f32 0.0, %v5140_v57 }
 0x3fa   :  { %v946_v63 = vadd.f32 %v945_v3, %v944_v62 }
 0x3fc   :  { %5143 = vtanh.f32 %v946_v63 }
 0x3fe   :  { %v5142_v0 = vpop.eup %5141 }
 0x406   :  { %v5144_v8 = vpop.eup %5143 }
 0x407   :  { %v948_v22 = vmul.f32 %v5144_v8, %v5142_v0 }
 0x409   :  { %4468 = vmatmul.mubr.msk.f32.vlgmr.msra.gmra.mrb[10].mxu1 %vm42_vm0, %v948_v22  ;;  %4479 = vmatmul.mubr.msk.f32.vlgmr.msra.gmra.mrb[10].mxu0 %vm42_vm0, %v948_v22 }
 0x40a   :  { %4926 = vmatpush3.bf16.msra.mxu1 %v5542_v18  ;;  %4932 = vmatpush3.bf16.msra.mxu0 %v5544_v19 }
 0x40b   :  { %4927 = vmatprep.subr.bf16.mxu1 %v5315_v7  ;;  %4933 = vmatprep.subr.bf16.mxu0 %v5315_v7 }
 0x40c   :  { %4489 = vmatprep.mubr.msk.f32.mxu1 %vm5316_vm5, %v5317_v17  ;;  %4500 = vmatprep.mubr.msk.f32.mxu0 %vm5316_vm5, %v5317_v17 }
 0x40e   :  { %4929 = vmatpush3.bf16.msra.mxu1 %v5564_v24  ;;  %4935 = vmatpush3.bf16.msra.mxu0 %v5566_v25 }
 0x40f   :  { %4936 = vmatprep.subr.bf16.mxu1 %v5315_v7  ;;  %4942 = vmatprep.subr.bf16.mxu0 %v5315_v7 }
 0x411   :  { %4490 = vmatmul.mubr.msk.f32.vlgmr.msra.gmra.mrb[12].mxu1 %vm42_vm0, %v948_v22  ;;  %4501 = vmatmul.mubr.msk.f32.vlgmr.msra.gmra.mrb[12].mxu0 %vm42_vm0, %v948_v22 }
 0x412   :  { %4938 = vmatpush3.bf16.msra.mxu1 %v5494_v4  ;;  %4944 = vmatpush3.bf16.msra.mxu0 %v5496_v5 }
 0x413   :  { %4939 = vmatprep.subr.bf16.mxu1 %v5315_v7  ;;  %4945 = vmatprep.subr.bf16.mxu0 %v5315_v7 }
 0x414   :  { %4511 = vmatprep.mubr.msk.f32.mxu1 %vm5316_vm5, %v5317_v17  ;;  %4522 = vmatprep.mubr.msk.f32.mxu0 %vm5316_vm5, %v5317_v17 }
 0x416   :  { %4941 = vmatpush3.bf16.msra.mxu1 %v5518_v11  ;;  %4947 = vmatpush3.bf16.msra.mxu0 %v5520_v12 }
 0x417   :  { %4948 = vmatprep.subr.bf16.mxu1 %v5315_v7  ;;  %4954 = vmatprep.subr.bf16.mxu0 %v5315_v7 }
 0x4dc   :  { %v1022_v1 = vpop.f32.mrb[10].mxu1  ;;  %v1097_v10 = vpop.f32.mrb[10].mxu0 }
 0x4dd   :  { %v1026_v44 = vadd.f32 %v1022_v1, %v5628_v50  ;;  %v1101_v45 = vadd.f32 %v1097_v10, %v5632_v51  ;;  %v4469_v30 = vpop.f32.mrb[11].mxu1  ;;  %v4480_v31 = vpop.f32.mrb[11].mxu0 }
 0x4df   :  { %v4070_v35 = vmul.f32 -1.442695, %v1026_v44  ;;  %v4071_v32 = vmul.f32 -1.442695, %v1101_v45 }
 0x4e1   :  { %5145 = vpow2.f32 %v4070_v35 }
 0x4e2   :  { %5147 = vpow2.f32 %v4071_v32 }
 0x4e4   :  { %v1172_v33 = vpop.f32.mrb[12].mxu1  ;;  %v1247_v43 = vpop.f32.mrb[12].mxu0 }
 0x4e5   :  { %v1176_v48 = vadd.f32 %v1172_v33, %v5684_v38  ;;  %v1251_v55 = vadd.f32 %v1247_v43, %v5688_v39  ;;  %v4491_v56 = vpop.f32.mrb[13].mxu1  ;;  %v4502_v2 = vpop.f32.mrb[13].mxu0 }
 0x4e7   :  { %v4072_v13 = vmul.f32 -1.442695, %v1251_v55 }
 0x4e9   :  { %5149 = vpow2.f32 %v4072_v13 }
 0x4ea   :  { %5151 = vtanh.f32 %v1176_v48 }
 0x4eb   :  { %v5146_v14 = vpop.eup %5145 }
 0x4ec   :  { %v5148_v57 = vpop.eup %5147  ;;  %v1255_v50 = vadd.f32 1.0, %v5146_v14 }
 0x4ed   :  { %v1261_v51 = vadd.f32 1.0, %v5148_v57 }
 0x4ee   :  { %5153 = vrcp.f32 %v1255_v50 }
 0x4ef   :  { %5155 = vrcp.f32 %v1261_v51 }
 0x4f3   :  { %v5150_v3 = vpop.eup %5149 }
 0x4f4   :  { %v5152_v59 = vpop.eup %5151  ;;  %v1268_v22 = vadd.f32 1.0, %v5150_v3 }
 0x4f6   :  { %5157 = vrcp.f32 %v1268_v22 }
 0x4f8   :  { %v5154_v62 = vpop.eup %5153 }
 0x4f9   :  { %v5156_v0 = vpop.eup %5155  ;;  %v1272_v8 = vmul.f32 %v5154_v62, %v5152_v59 }
 0x4fa   :  { %v1271_v38 = vmul.f32 %v5156_v0, %v946_v63 }
 0x4fc   :  { %v1273_v1 = vadd.f32 %v1272_v8, %v1271_v38 }
 0x4fe   :  { %5159 = vtanh.f32 %v1273_v1 }
 0x500   :  { %v5158_v39 = vpop.eup %5157 }
 0x508   :  { %v5160_v10 = vpop.eup %5159 }
 0x509   :  { %v1275_v44 = vmul.f32 %v5160_v10, %v5158_v39 }
 0x50b   :  { %4512 = vmatmul.mubr.msk.f32.vlgmr.msra.gmra.mrb[14].mxu1 %vm42_vm0, %v1275_v44  ;;  %4523 = vmatmul.mubr.msk.f32.vlgmr.msra.gmra.mrb[14].mxu0 %vm42_vm0, %v1275_v44 }
 0x50c   :  { %4950 = vmatpush3.bf16.msra.mxu1 %v5542_v18  ;;  %4956 = vmatpush3.bf16.msra.mxu0 %v5544_v19 }
 0x50d   :  { %4951 = vmatprep.subr.bf16.mxu1 %v5315_v7  ;;  %4957 = vmatprep.subr.bf16.mxu0 %v5315_v7 }
 0x50e   :  { %4533 = vmatprep.mubr.msk.f32.mxu1 %vm5316_vm5, %v5317_v17  ;;  %4544 = vmatprep.mubr.msk.f32.mxu0 %vm5316_vm5, %v5317_v17 }
 0x510   :  { %4953 = vmatpush3.bf16.msra.mxu1 %v5564_v24  ;;  %4959 = vmatpush3.bf16.msra.mxu0 %v5566_v25 }
 0x511   :  { %4960 = vmatprep.subr.bf16.mxu1 %v5315_v7  ;;  %4966 = vmatprep.subr.bf16.mxu0 %v5315_v7 }
 0x513   :  { %4534 = vmatmul.mubr.msk.f32.vlgmr.msra.gmra.mrb[16].mxu1 %vm42_vm0, %v1275_v44  ;;  %4545 = vmatmul.mubr.msk.f32.vlgmr.msra.gmra.mrb[16].mxu0 %vm42_vm0, %v1275_v44 }
 0x514   :  { %4962 = vmatpush3.bf16.msra.mxu1 %v5494_v4  ;;  %4968 = vmatpush3.bf16.msra.mxu0 %v5496_v5 }
 0x515   :  { %4963 = vmatprep.subr.bf16.mxu1 %v5315_v7  ;;  %4969 = vmatprep.subr.bf16.mxu0 %v5315_v7 }
 0x516   :  { %4555 = vmatprep.mubr.msk.f32.mxu1 %vm5316_vm5, %v5317_v17  ;;  %4566 = vmatprep.mubr.msk.f32.mxu0 %vm5316_vm5, %v5317_v17 }
 0x518   :  { %4965 = vmatpush3.bf16.msra.mxu1 %v5518_v11  ;;  %4971 = vmatpush3.bf16.msra.mxu0 %v5520_v12 }
 0x519   :  { %4972 = vmatprep.subr.bf16.mxu1 %v5315_v7  ;;  %4978 = vmatprep.subr.bf16.mxu0 %v5315_v7 }
 0x5de   :  { %v1350_v63 = vpop.f32.mrb[14].mxu1  ;;  %v1426_v45 = vpop.f32.mrb[14].mxu0 }
 0x5df   :  { %v1354_v30 = vadd.f32 %v1350_v63, %v5635_v52  ;;  %v1430_v31 = vadd.f32 %v1426_v45, %v5638_v53  ;;  %v4513_v35 = vpop.f32.mrb[15].mxu1  ;;  %v4524_v32 = vpop.f32.mrb[15].mxu0 }
 0x5e1   :  { %v4077_v33 = vmul.f32 -1.442695, %v1354_v30  ;;  %v4078_v43 = vmul.f32 -1.442695, %v1430_v31 }
 0x5e3   :  { %5161 = vpow2.f32 %v4077_v33 }
 0x5e4   :  { %5163 = vpow2.f32 %v4078_v43 }
 0x5e6   :  { %v1502_v48 = vpop.f32.mrb[16].mxu1  ;;  %v1578_v55 = vpop.f32.mrb[16].mxu0 }
 0x5e7   :  { %v1506_v56 = vadd.f32 %v1502_v48, %v5691_v40  ;;  %v1582_v2 = vadd.f32 %v1578_v55, %v5694_v41  ;;  %v4535_v13 = vpop.f32.mrb[17].mxu1  ;;  %v4546_v14 = vpop.f32.mrb[17].mxu0 }
 0x5e9   :  { %v4079_v57 = vmul.f32 -1.442695, %v1582_v2 }
 0x5eb   :  { %5165 = vpow2.f32 %v4079_v57 }
 0x5ec   :  { %5167 = vtanh.f32 %v1506_v56 }
 0x5ed   :  { %v5162_v50 = vpop.eup %5161 }
 0x5ee   :  { %v5164_v51 = vpop.eup %5163  ;;  %v1586_v52 = vadd.f32 1.0, %v5162_v50 }
 0x5ef   :  { %v1592_v53 = vadd.f32 1.0, %v5164_v51 }
 0x5f0   :  { %5169 = vrcp.f32 %v1586_v52 }
 0x5f1   :  { %5171 = vrcp.f32 %v1592_v53 }
 0x5f5   :  { %v5166_v3 = vpop.eup %5165 }
 0x5f6   :  { %v5168_v59 = vpop.eup %5167  ;;  %v1599_v22 = vadd.f32 1.0, %v5166_v3 }
 0x5f8   :  { %5173 = vrcp.f32 %v1599_v22 }
 0x5fa   :  { %v5170_v62 = vpop.eup %5169 }
 0x5fb   :  { %v5172_v0 = vpop.eup %5171  ;;  %v1603_v8 = vmul.f32 %v5170_v62, %v5168_v59 }
 0x5fc   :  { %v1602_v40 = vmul.f32 %v5172_v0, %v1273_v1 }
 0x5fe   :  { %v1604_v38 = vadd.f32 %v1603_v8, %v1602_v40 }
 0x600   :  { %5175 = vtanh.f32 %v1604_v38 }
 0x602   :  { %v5174_v41 = vpop.eup %5173 }
 0x60a   :  { %v5176_v39 = vpop.eup %5175 }
 0x60b   :  { %v1606_v10 = vmul.f32 %v5176_v39, %v5174_v41 }
 0x60d   :  { %4556 = vmatmul.mubr.msk.f32.vlgmr.msra.gmra.mrb[18].mxu1 %vm42_vm0, %v1606_v10  ;;  %4567 = vmatmul.mubr.msk.f32.vlgmr.msra.gmra.mrb[18].mxu0 %vm42_vm0, %v1606_v10 }
 0x60e   :  { %4974 = vmatpush3.bf16.msra.mxu1 %v5542_v18  ;;  %4980 = vmatpush3.bf16.msra.mxu0 %v5544_v19 }
 0x60f   :  { %4975 = vmatprep.subr.bf16.mxu1 %v5315_v7  ;;  %4981 = vmatprep.subr.bf16.mxu0 %v5315_v7 }
 0x610   :  { %4577 = vmatprep.mubr.msk.f32.mxu1 %vm5316_vm5, %v5317_v17  ;;  %4588 = vmatprep.mubr.msk.f32.mxu0 %vm5316_vm5, %v5317_v17 }
 0x612   :  { %4977 = vmatpush3.bf16.msra.mxu1 %v5564_v24  ;;  %4983 = vmatpush3.bf16.msra.mxu0 %v5566_v25 }
 0x613   :  { %4984 = vmatprep.subr.bf16.mxu1 %v5315_v7  ;;  %4990 = vmatprep.subr.bf16.mxu0 %v5315_v7 }
 0x615   :  { %4578 = vmatmul.mubr.msk.f32.vlgmr.msra.gmra.mrb[20].mxu1 %vm42_vm0, %v1606_v10  ;;  %4589 = vmatmul.mubr.msk.f32.vlgmr.msra.gmra.mrb[20].mxu0 %vm42_vm0, %v1606_v10 }
 0x616   :  { %4986 = vmatpush3.bf16.msra.mxu1 %v5494_v4  ;;  %4992 = vmatpush3.bf16.msra.mxu0 %v5496_v5 }
 0x617   :  { %4987 = vmatprep.subr.bf16.mxu1 %v5315_v7  ;;  %4993 = vmatprep.subr.bf16.mxu0 %v5315_v7 }
 0x618   :  { %4599 = vmatprep.mubr.msk.f32.mxu1 %vm5316_vm5, %v5317_v17  ;;  %4610 = vmatprep.mubr.msk.f32.mxu0 %vm5316_vm5, %v5317_v17 }
 0x61a   :  { %4989 = vmatpush3.bf16.msra.mxu1 %v5518_v11  ;;  %4995 = vmatpush3.bf16.msra.mxu0 %v5520_v12 }
 0x61b   :  { %4996 = vmatprep.subr.bf16.mxu1 %v5315_v7  ;;  %5002 = vmatprep.subr.bf16.mxu0 %v5315_v7 }
 0x6e0   :  { %v1681_v1 = vpop.f32.mrb[18].mxu1  ;;  %v1757_v44 = vpop.f32.mrb[18].mxu0 }
 0x6e1   :  { %v1685_v63 = vadd.f32 %v1681_v1, %v5641_v54  ;;  %v1761_v45 = vadd.f32 %v1757_v44, %v5655_v9  ;;  %v4557_v30 = vpop.f32.mrb[19].mxu1  ;;  %v4568_v31 = vpop.f32.mrb[19].mxu0 }
 0x6e3   :  { %v4084_v35 = vmul.f32 -1.442695, %v1685_v63  ;;  %v4085_v32 = vmul.f32 -1.442695, %v1761_v45 }
 0x6e5   :  { %5177 = vpow2.f32 %v4084_v35 }
 0x6e6   :  { %5179 = vpow2.f32 %v4085_v32 }
 0x6e8   :  { %v1833_v33 = vpop.f32.mrb[20].mxu1  ;;  %v1909_v43 = vpop.f32.mrb[20].mxu0 }
 0x6e9   :  { %v1837_v48 = vadd.f32 %v1833_v33, %v5697_v42  ;;  %v1913_v55 = vadd.f32 %v1909_v43, %v5709_v6  ;;  %v4579_v56 = vpop.f32.mrb[21].mxu1  ;;  %v4590_v2 = vpop.f32.mrb[21].mxu0 }
 0x6eb   :  { %v4086_v13 = vmul.f32 -1.442695, %v1913_v55 }
 0x6ed   :  { %5181 = vpow2.f32 %v4086_v13 }
 0x6ee   :  { %5183 = vtanh.f32 %v1837_v48 }
 0x6ef   :  { %v5178_v14 = vpop.eup %5177 }
 0x6f0   :  { %v5180_v57 = vpop.eup %5179  ;;  %v1917_v54 = vadd.f32 1.0, %v5178_v14 }
 0x6f1   :  { %v1923_v9 = vadd.f32 1.0, %v5180_v57 }
 0x6f2   :  { %5185 = vrcp.f32 %v1917_v54 }
 0x6f3   :  { %5187 = vrcp.f32 %v1923_v9 }
 0x6f7   :  { %v5182_v50 = vpop.eup %5181 }
 0x6f8   :  { %v5184_v51 = vpop.eup %5183  ;;  %v1930_v59 = vadd.f32 1.0, %v5182_v50 }
 0x6fa   :  { %5189 = vrcp.f32 %v1930_v59 }
 0x6fc   :  { %v5186_v52 = vpop.eup %5185 }
 0x6fd   :  { %v5188_v53 = vpop.eup %5187  ;;  %v1934_v3 = vmul.f32 %v5186_v52, %v5184_v51 }
 0x6fe   :  { %v1933_v42 = vmul.f32 %v5188_v53, %v1604_v38 }
 0x700   :  { %v1935_v62 = vadd.f32 %v1934_v3, %v1933_v42 }
 0x702   :  { %5191 = vtanh.f32 %v1935_v62 }
 0x704   :  { %v5190_v6 = vpop.eup %5189 }
 0x70c   :  { %v5192_v0 = vpop.eup %5191 }
 0x70d   :  { %v1937_v8 = vmul.f32 %v5192_v0, %v5190_v6 }
 0x70f   :  { %4600 = vmatmul.mubr.msk.f32.vlgmr.msra.gmra.mrb[22].mxu1 %vm42_vm0, %v1937_v8  ;;  %4611 = vmatmul.mubr.msk.f32.vlgmr.msra.gmra.mrb[22].mxu0 %vm42_vm0, %v1937_v8 }
 0x710   :  { %4998 = vmatpush3.bf16.msra.mxu1 %v5542_v18  ;;  %5004 = vmatpush3.bf16.msra.mxu0 %v5544_v19 }
 0x711   :  { %4999 = vmatprep.subr.bf16.mxu1 %v5315_v7  ;;  %5005 = vmatprep.subr.bf16.mxu0 %v5315_v7 }
 0x712   :  { %4621 = vmatprep.mubr.msk.f32.mxu1 %vm5316_vm5, %v5317_v17  ;;  %4632 = vmatprep.mubr.msk.f32.mxu0 %vm5316_vm5, %v5317_v17 }
 0x714   :  { %5001 = vmatpush3.bf16.msra.mxu1 %v5564_v24  ;;  %5007 = vmatpush3.bf16.msra.mxu0 %v5566_v25 }
 0x715   :  { %5008 = vmatprep.subr.bf16.mxu1 %v5315_v7  ;;  %5014 = vmatprep.subr.bf16.mxu0 %v5315_v7 }
 0x717   :  { %4622 = vmatmul.mubr.msk.f32.vlgmr.msra.gmra.mrb[24].mxu1 %vm42_vm0, %v1937_v8  ;;  %4633 = vmatmul.mubr.msk.f32.vlgmr.msra.gmra.mrb[24].mxu0 %vm42_vm0, %v1937_v8 }
 0x718   :  { %5010 = vmatpush3.bf16.msra.mxu1 %v5494_v4  ;;  %5016 = vmatpush3.bf16.msra.mxu0 %v5496_v5 }
 0x719   :  { %5011 = vmatprep.subr.bf16.mxu1 %v5315_v7  ;;  %5017 = vmatprep.subr.bf16.mxu0 %v5315_v7 }
 0x71a   :  { %4643 = vmatprep.mubr.msk.f32.mxu1 %vm5316_vm5, %v5317_v17  ;;  %4654 = vmatprep.mubr.msk.f32.mxu0 %vm5316_vm5, %v5317_v17 }
 0x71c   :  { %5013 = vmatpush3.bf16.msra.mxu1 %v5518_v11  ;;  %5019 = vmatpush3.bf16.msra.mxu0 %v5520_v12 }
 0x71d   :  { %5020 = vmatprep.subr.bf16.mxu1 %v5315_v7  ;;  %5026 = vmatprep.subr.bf16.mxu0 %v5315_v7 }
 0x7e2   :  { %v2012_v22 = vpop.f32.mrb[22].mxu1  ;;  %v2088_v40 = vpop.f32.mrb[22].mxu0 }
 0x7e3   :  { %v2016_v38 = vadd.f32 %v2012_v22, %v5663_v15  ;;  %v2092_v41 = vadd.f32 %v2088_v40, %v5666_v16  ;;  %v4601_v39 = vpop.f32.mrb[23].mxu1  ;;  %v4612_v10 = vpop.f32.mrb[23].mxu0 }
 0x7e5   :  { %v4091_v1 = vmul.f32 -1.442695, %v2016_v38  ;;  %v4092_v44 = vmul.f32 -1.442695, %v2092_v41 }
 0x7e7   :  { %5193 = vpow2.f32 %v4091_v1 }
 0x7e8   :  { %5195 = vpow2.f32 %v4092_v44 }
 0x7ea   :  { %v2164_v63 = vpop.f32.mrb[24].mxu1  ;;  %v2240_v45 = vpop.f32.mrb[24].mxu0 }
 0x7eb   :  { %v2168_v30 = vadd.f32 %v2164_v63, %v5713_v20  ;;  %v2244_v31 = vadd.f32 %v2240_v45, %v5716_v21  ;;  %v4623_v35 = vpop.f32.mrb[25].mxu1  ;;  %v4634_v32 = vpop.f32.mrb[25].mxu0 }
 0x7ed   :  { %v4093_v33 = vmul.f32 -1.442695, %v2244_v31 }
 0x7ef   :  { %5197 = vpow2.f32 %v4093_v33 }
 0x7f0   :  { %5199 = vtanh.f32 %v2168_v30 }
 0x7f1   :  { %v5194_v43 = vpop.eup %5193 }
 0x7f2   :  { %v5196_v48 = vpop.eup %5195  ;;  %v2248_v15 = vadd.f32 1.0, %v5194_v43 }
 0x7f3   :  { %v2254_v16 = vadd.f32 1.0, %v5196_v48 }
 0x7f4   :  { %5201 = vrcp.f32 %v2248_v15 }
 0x7f5   :  { %5203 = vrcp.f32 %v2254_v16 }
 0x7f9   :  { %v5198_v55 = vpop.eup %5197 }
 0x7fa   :  { %v5200_v56 = vpop.eup %5199  ;;  %v2261_v57 = vadd.f32 1.0, %v5198_v55 }
 0x7fc   :  { %5205 = vrcp.f32 %v2261_v57 }
 0x7fe   :  { %v5202_v2 = vpop.eup %5201 }
 0x7ff   :  { %v5204_v13 = vpop.eup %5203  ;;  %v2265_v14 = vmul.f32 %v5202_v2, %v5200_v56 }
 0x800   :  { %v2264_v20 = vmul.f32 %v5204_v13, %v1935_v62 }
 0x802   :  { %v2266_v54 = vadd.f32 %v2265_v14, %v2264_v20 }
 0x804   :  { %5207 = vtanh.f32 %v2266_v54 }
 0x806   :  { %v5206_v21 = vpop.eup %5205 }
 0x80e   :  { %v5208_v9 = vpop.eup %5207 }
 0x80f   :  { %v2268_v50 = vmul.f32 %v5208_v9, %v5206_v21 }
 0x811   :  { %4644 = vmatmul.mubr.msk.f32.vlgmr.msra.gmra.mrb[26].mxu1 %vm42_vm0, %v2268_v50  ;;  %4655 = vmatmul.mubr.msk.f32.vlgmr.msra.gmra.mrb[26].mxu0 %vm42_vm0, %v2268_v50 }
 0x812   :  { %5022 = vmatpush3.bf16.msra.mxu1 %v5542_v18  ;;  %5028 = vmatpush3.bf16.msra.mxu0 %v5544_v19 }
 0x813   :  { %5023 = vmatprep.subr.bf16.mxu1 %v5315_v7  ;;  %5029 = vmatprep.subr.bf16.mxu0 %v5315_v7 }
 0x814   :  { %4665 = vmatprep.mubr.msk.f32.mxu1 %vm5316_vm5, %v5317_v17  ;;  %4676 = vmatprep.mubr.msk.f32.mxu0 %vm5316_vm5, %v5317_v17 }
 0x816   :  { %5025 = vmatpush3.bf16.msra.mxu1 %v5564_v24  ;;  %5031 = vmatpush3.bf16.msra.mxu0 %v5566_v25 }
 0x817   :  { %5032 = vmatprep.subr.bf16.mxu1 %v5315_v7  ;;  %5038 = vmatprep.subr.bf16.mxu0 %v5315_v7 }
 0x819   :  { %4666 = vmatmul.mubr.msk.f32.vlgmr.msra.gmra.mrb[28].mxu1 %vm42_vm0, %v2268_v50  ;;  %4677 = vmatmul.mubr.msk.f32.vlgmr.msra.gmra.mrb[28].mxu0 %vm42_vm0, %v2268_v50 }
 0x81a   :  { %5034 = vmatpush3.bf16.msra.mxu1 %v5494_v4  ;;  %5040 = vmatpush3.bf16.msra.mxu0 %v5496_v5 }
 0x81b   :  { %5035 = vmatprep.subr.bf16.mxu1 %v5315_v7  ;;  %5041 = vmatprep.subr.bf16.mxu0 %v5315_v7 }
 0x81c   :  { %4687 = vmatprep.mubr.msk.f32.mxu1 %vm5316_vm5, %v5317_v17  ;;  %4698 = vmatprep.mubr.msk.f32.mxu0 %vm5316_vm5, %v5317_v17 }
 0x81e   :  { %5037 = vmatpush3.bf16.msra.mxu1 %v5518_v11  ;;  %5043 = vmatpush3.bf16.msra.mxu0 %v5520_v12 }
 0x81f   :  { %5044 = vmatprep.subr.bf16.mxu1 %v5315_v7  ;;  %5050 = vmatprep.subr.bf16.mxu0 %v5315_v7 }
 0x8e4   :  { %v2343_v51 = vpop.f32.mrb[26].mxu1  ;;  %v2419_v52 = vpop.f32.mrb[26].mxu0 }
 0x8e5   :  { %v2347_v53 = vadd.f32 %v2343_v51, %v5706_v58  ;;  %v2423_v3 = vadd.f32 %v2419_v52, %v5723_v26  ;;  %v4645_v59 = vpop.f32.mrb[27].mxu1  ;;  %v4656_v42 = vpop.f32.mrb[27].mxu0 }
 0x8e7   :  { %v4098_v62 = vmul.f32 -1.442695, %v2347_v53  ;;  %v4099_v6 = vmul.f32 -1.442695, %v2423_v3 }
 0x8e9   :  { %5209 = vpow2.f32 %v4098_v62 }
 0x8ea   :  { %5211 = vpow2.f32 %v4099_v6 }
 0x8ec   :  { %v2495_v0 = vpop.f32.mrb[28].mxu1  ;;  %v2571_v8 = vpop.f32.mrb[28].mxu0 }
 0x8ed   :  { %v2499_v22 = vadd.f32 %v2495_v0, %v5729_v36  ;;  %v2575_v40 = vadd.f32 %v2571_v8, %v5734_v46  ;;  %v4667_v38 = vpop.f32.mrb[29].mxu1  ;;  %v4678_v41 = vpop.f32.mrb[29].mxu0  ;;  %v3349_v0 = vld [vmem:[%s6109_s7 + $0x8] sm:$0xff]  ;;  %v3266_v8 = vld [vmem:[%s6108_s6 + $0x10] sm:$0xff] }
 0x8ee   :  { %v3350_v38 = vld [vmem:[%s6109_s7 + $0x10] sm:$0xff]  ;;  %v3351_v41 = vld [vmem:[%s6109_s7 + $0x18] sm:$0xff] }
 0x8ef   :  { %v4100_v39 = vmul.f32 -1.442695, %v2575_v40 }
 0x8f1   :  { %5213 = vpow2.f32 %v4100_v39 }
 0x8f2   :  { %5215 = vtanh.f32 %v2499_v22  ;;  %v3267_v22 = vld [vmem:[%s6108_s6 + $0x18] sm:$0xff] }
 0x8f3   :  { %v5210_v10 = vpop.eup %5209  ;;  %v5084_v39 = vpack.c.bf16 %v3267_v22, %v3266_v8 }
 0x8f4   :  { %v5212_v1 = vpop.eup %5211  ;;  %v2579_v58 = vadd.f32 1.0, %v5210_v10  ;;  %v6015_v10 = vpack.c.bf16 %v3351_v41, %v3350_v38 }
 0x8f5   :  { %v2585_v26 = vadd.f32 1.0, %v5212_v1 }
 0x8f6   :  { %5217 = vrcp.f32 %v2579_v58 }
 0x8f7   :  { %5219 = vrcp.f32 %v2585_v26 }
 0x8fb   :  { %v5214_v44 = vpop.eup %5213 }
 0x8fc   :  { %v5216_v63 = vpop.eup %5215  ;;  %v2592_v35 = vadd.f32 1.0, %v5214_v44 }
 0x8fe   :  { %5221 = vrcp.f32 %v2592_v35 }
 0x900   :  { %v5218_v45 = vpop.eup %5217 }
 0x901   :  { %v5220_v30 = vpop.eup %5219  ;;  %v2596_v31 = vmul.f32 %v5218_v45, %v5216_v63 }
 0x902   :  { %v2595_v36 = vmul.f32 %v5220_v30, %v2266_v54 }
 0x904   :  { %v2597_v32 = vadd.f32 %v2596_v31, %v2595_v36 }
 0x906   :  { %5223 = vtanh.f32 %v2597_v32 }
 0x908   :  { %v5222_v46 = vpop.eup %5221 }
 0x910   :  { %v5224_v33 = vpop.eup %5223 }
 0x911   :  { %v2599_v43 = vmul.f32 %v5224_v33, %v5222_v46 }
 0x913   :  { %4688 = vmatmul.mubr.msk.f32.vlgmr.msra.gmra.mrb[30].mxu1 %vm42_vm0, %v2599_v43  ;;  %4699 = vmatmul.mubr.msk.f32.vlgmr.msra.gmra.mrb[30].mxu0 %vm42_vm0, %v2599_v43 }
 0x914   :  { %5046 = vmatpush3.bf16.msra.mxu1 %v5542_v18  ;;  %5052 = vmatpush3.bf16.msra.mxu0 %v5544_v19 }
 0x915   :  { %5047 = vmatprep.subr.bf16.mxu1 %v5315_v7  ;;  %5053 = vmatprep.subr.bf16.mxu0 %v5315_v7 }
 0x916   :  { %4709 = vmatprep.mubr.msk.f32.mxu1 %vm5316_vm5, %v5317_v17  ;;  %4720 = vmatprep.mubr.msk.f32.mxu0 %vm5316_vm5, %v5317_v17 }
 0x918   :  { %5049 = vmatpush3.bf16.msra.mxu1 %v5564_v24  ;;  %5055 = vmatpush3.bf16.msra.mxu0 %v5566_v25 }
 0x919   :  { %5056 = vmatprep.subr.bf16.mxu1 %v5315_v7  ;;  %5062 = vmatprep.subr.bf16.mxu0 %v5315_v7 }
 0x91b   :  { %4710 = vmatmul.mubr.msk.f32.vlgmr.msra.gmra.mrb[32].mxu1 %vm42_vm0, %v2599_v43  ;;  %4721 = vmatmul.mubr.msk.f32.vlgmr.msra.gmra.mrb[32].mxu0 %vm42_vm0, %v2599_v43 }
 0x91c   :  { %5058 = vmatpush3.bf16.msra.mxu1 %v5494_v4  ;;  %5064 = vmatpush3.bf16.msra.mxu0 %v5496_v5 }
 0x91d   :  { %5059 = vmatprep.subr.bf16.mxu1 %v5315_v7  ;;  %5065 = vmatprep.subr.bf16.mxu0 %v5315_v7 }
 0x91e   :  { %4731 = vmatprep.mubr.msk.f32.mxu1 %vm5316_vm5, %v5317_v17  ;;  %4742 = vmatprep.mubr.msk.f32.mxu0 %vm5316_vm5, %v5317_v17 }
 0x920   :  { %5061 = vmatpush3.bf16.msra.mxu1 %v5518_v11  ;;  %5067 = vmatpush3.bf16.msra.mxu0 %v5520_v12 }
 0x921   :  { %5068 = vmatprep.subr.bf16.mxu1 %v5315_v7  ;;  %5074 = vmatprep.subr.bf16.mxu0 %v5315_v7 }
 0x9e6   :  { %v2674_v4 = vpop.f32.mrb[30].mxu1  ;;  %v2750_v5 = vpop.f32.mrb[30].mxu0 }
 0x9e7   :  { %v2678_v48 = vadd.f32 %v2674_v4, %v5737_v47  ;;  %v2754_v15 = vadd.f32 %v2750_v5, %v5741_v49  ;;  %v4689_v16 = vpop.f32.mrb[31].mxu1  ;;  %v4700_v55 = vpop.f32.mrb[31].mxu0 }
 0x9e9   :  { %v4105_v56 = vmul.f32 -1.442695, %v2678_v48  ;;  %v4106_v2 = vmul.f32 -1.442695, %v2754_v15 }
 0x9eb   :  { %5225 = vpow2.f32 %v4105_v56 }
 0x9ec   :  { %5227 = vpow2.f32 %v4106_v2 }
 0x9ee   :  { %v2826_v13 = vpop.f32.mrb[32].mxu1  ;;  %v2902_v11 = vpop.f32.mrb[32].mxu0 }
 0x9ef   :  { %v2830_v12 = vadd.f32 %v2826_v13, %v5751_v23  ;;  %v2906_v14 = vadd.f32 %v2902_v11, %v5754_v27  ;;  %v4711_v57 = vpop.f32.mrb[33].mxu1  ;;  %v4722_v20 = vpop.f32.mrb[33].mxu0 }
 0x9f1   :  { %v4107_v54 = vmul.f32 -1.442695, %v2906_v14 }
 0x9f3   :  { %5229 = vpow2.f32 %v4107_v54  ;;  %v4115_v54 = vld [vmem:[%s6110_s8] ss:$0 sm:$0xff]  ;;  %s5318_s8 = smov [#allocation4]  }
 0x9f4   :  { %5231 = vtanh.f32 %v2830_v12  ;;  %s4007_s20 = sshll.u32 %s5318_s8, 4  ;;  %s4008_s20 = int_to_ptr.vmem [resolvable:$true] %s4007_s20 }
 0x9f5   :  { %v5226_v21 = vpop.eup %5225  ;;  %s5265_s21 = scalar_lea.vmem %s4008_s20, 32  ;;  %p5270_p1 = scmp.lt.s32.totalorder %s4008_s20, %s4008_s20 }
 0x9f6   :  { %v5228_v9 = vpop.eup %5227  ;;  %v2910_v47 = vadd.f32 1.0, %v5226_v21  ;;  %p5266_p0 = scmp.ne.s32.totalorder %s4008_s20, %s5265_s21  ;;  %p5271_p2 = scmp.lt.s32.totalorder %s5265_s21, %s5265_s21 }
 0x9f7   :  { %v2916_v49 = vadd.f32 1.0, %v5228_v9 }
 0x9f8   :  { %5233 = vrcp.f32 %v2910_v47  ;;  %p5272_p3 = por %p5271_p2, %p5270_p1 }
 0x9f9   :  { %5235 = vrcp.f32 %v2916_v49 }
 0x9fa   :  { %p5273_p4 = pnand %p5272_p3, %p5266_p0 }
 0x9fd   :  { %v5230_v50 = vpop.eup %5229 }
 0x9fe   :  { %v5232_v51 = vpop.eup %5231  ;;  %v2923_v59 = vadd.f32 1.0, %v5230_v50 }
 0xa00   :  { %5237 = vrcp.f32 %v2923_v59 }
 0xa02   :  { %v5234_v52 = vpop.eup %5233 }
 0xa03   :  { %v5236_v53 = vpop.eup %5235  ;;  %v2927_v3 = vmul.f32 %v5234_v52, %v5232_v51 }
 0xa04   :  { %v2926_v23 = vmul.f32 %v5236_v53, %v2597_v32 }
 0xa06   :  { %v5964_v42 = vadd.f32 %v2927_v3, %v2926_v23 }
 0xa08   :  { %5239 = vtanh.f32 %v5964_v42 }
 0xa0a   :  { %v5238_v27 = vpop.eup %5237 }
 0xa12   :  { %v5240_v62 = vpop.eup %5239 }
 0xa13   :  { %v2930_v6 = vmul.f32 %v5240_v62, %v5238_v27 }
 0xa15   :  { %4732 = vmatmul.mubr.msk.f32.vlgmr.msra.gmra.mrb[34].mxu1 %vm42_vm0, %v2930_v6  ;;  %4743 = vmatmul.mubr.msk.f32.vlgmr.msra.gmra.mrb[34].mxu0 %vm42_vm0, %v2930_v6 }
 0xa16   :  { %5070 = vmatpush3.bf16.msra.mxu1 %v5542_v18  ;;  %5076 = vmatpush3.bf16.msra.mxu0 %v5544_v19  ;;  %v3264_v18 = vld [vmem:[%s6108_s6] sm:$0xff]  ;;  %v3265_v19 = vld [vmem:[%s6108_s6 + $0x8] sm:$0xff] }
 0xa17   :  { %5071 = vmatprep.subr.bf16.mxu1 %v5315_v7  ;;  %5077 = vmatprep.subr.bf16.mxu0 %v5315_v7 }
 0xa18   :  { %4753 = vmatprep.mubr.msk.f32.mxu1 %vm5316_vm5, %v5317_v17  ;;  %4764 = vmatprep.mubr.msk.f32.mxu0 %vm5316_vm5, %v5317_v17 }
 0xa1a   :  { %5073 = vmatpush3.bf16.msra.mxu1 %v5564_v24  ;;  %5079 = vmatpush3.bf16.msra.mxu0 %v5566_v25  ;;  %v3348_v24 = vld [vmem:[%s6109_s7] sm:$0xff]  ;;  %v5081_v25 = vpack.c.bf16 %v3265_v19, %v3264_v18 }
 0xa1b   :  { %5080 = vmatprep.subr.bf16.mxu1 %v5315_v7  ;;  %5086 = vmatprep.subr.bf16.mxu0 %v5315_v7  ;;  %v6005_v40 = vpack.c.bf16 %v3349_v0, %v3348_v24 }
 0xa1d   :  { %4754 = vmatmul.mubr.msk.f32.vlgmr.msra.gmra.mrb[36].mxu1 %vm42_vm0, %v2930_v6  ;;  %4765 = vmatmul.mubr.msk.f32.vlgmr.msra.gmra.mrb[36].mxu0 %vm42_vm0, %v2930_v6 }
 0xa1e   :  { %4775 = vmatprep.mubr.msk.f32.mxu1 %vm5316_vm5, %v5317_v17  ;;  %4786 = vmatprep.mubr.msk.f32.mxu0 %vm5316_vm5, %v5317_v17 }
 0xa1f   :  { %5082 = vmatpush3.bf16.msra.mxu1 %v5081_v25  ;;  %5088 = vmatpush3.bf16.msra.mxu0 %v6005_v40 }
 0xa20   :  { %5083 = vmatprep.subr.bf16.mxu1 %v5315_v7  ;;  %5089 = vmatprep.subr.bf16.mxu0 %v5315_v7 }
 0xa23   :  { %5085 = vmatpush3.bf16.msra.mxu1 %v5084_v39  ;;  %5091 = vmatpush3.bf16.msra.mxu0 %v6015_v10 }
 0xa24   :  { %5092 = vmatprep.subr.bf16.mxu1 %v5315_v7  ;;  %5098 = vmatprep.subr.bf16.mxu0 %v5315_v7 }
 0xa26   :  { %4787 = vmatmul.mubr.f32.vlgmr.msra.gmra.mrb[38].mxu0 %v5317_v17 }
 0xa27   :  { %5100 = vmatpush3.bf16.msra.mxu0 %v6005_v40  ;;  %4808 = vmatprep.mubr.msk.f32.mxu0 %vm5316_vm5, %v5317_v17 }
 0xa28   :  { %5101 = vmatprep.subr.bf16.mxu0 %v5315_v7 }
 0xa2b   :  { %5103 = vmatpush3.bf16.msra.mxu0 %v6015_v10 }
 0xa2c   :  { %4822 = vmatprep.subr.mxu0 %v5317_v17 }
 0xae8   :  { %v3005_v1 = vpop.f32.mrb[34].mxu1  ;;  %v3081_v58 = vpop.f32.mrb[34].mxu0 }
 0xae9   :  { %v3009_v26 = vadd.f32 %v3005_v1, %v5757_v28  ;;  %v3085_v44 = vadd.f32 %v3081_v58, %v5760_v34  ;;  %v4733_v63 = vpop.f32.mrb[35].mxu1  ;;  %v4744_v45 = vpop.f32.mrb[35].mxu0 }
 0xaeb   :  { %v4112_v30 = vmul.f32 -1.442695, %v3009_v26  ;;  %v4113_v31 = vmul.f32 -1.442695, %v3085_v44 }
 0xaed   :  { %5241 = vpow2.f32 %v4112_v30 }
 0xaee   :  { %5243 = vpow2.f32 %v4113_v31 }
 0xaf0   :  { %v3157_v35 = vpop.f32.mrb[36].mxu1  ;;  %v3233_v36 = vpop.f32.mrb[36].mxu0 }
 0xaf1   :  { %v3161_v32 = vadd.f32 %v3157_v35, %v5767_v29  ;;  %v3237_v46 = vadd.f32 %v3233_v36, %v5770_v37  ;;  %v4755_v33 = vpop.f32.mrb[37].mxu1  ;;  %v4766_v43 = vpop.f32.mrb[37].mxu0 }
 0xaf3   :  { %v4114_v4 = vmul.f32 -1.442695, %v3237_v46 }
 0xaf5   :  { %5245 = vpow2.f32 %v4114_v4 }
 0xaf6   :  { %5247 = vtanh.f32 %v3161_v32 }
 0xaf7   :  { %v5242_v5 = vpop.eup %5241 }
 0xaf8   :  { %v5244_v48 = vpop.eup %5243  ;;  %v3241_v28 = vadd.f32 1.0, %v5242_v5 }
 0xaf9   :  { %v3247_v34 = vadd.f32 1.0, %v5244_v48  ;;  %v3418_v57 = vpop.f32.mrb[38].mxu0 }
 0xafa   :  { %5249 = vrcp.f32 %v3241_v28  ;;  %v4788_v20 = vpop.f32.mrb[39].mxu0 }
 0xafb   :  { %5251 = vrcp.f32 %v3247_v34 }
 0xaff   :  { %v5246_v15 = vpop.eup %5245 }
 0xb00   :  { %v5248_v16 = vpop.eup %5247  ;;  %v3254_v13 = vadd.f32 1.0, %v5246_v15 }
 0xb02   :  { %5253 = vrcp.f32 %v3254_v13 }
 0xb04   :  { %v5250_v55 = vpop.eup %5249 }
 0xb05   :  { %v5252_v56 = vpop.eup %5251  ;;  %v3258_v2 = vmul.f32 %v5250_v55, %v5248_v16 }
 0xb06   :  { %v3257_v29 = vmul.f32 %v5252_v56, %v5964_v42 }
 0xb08   :  { %v3259_v37 = vadd.f32 %v3258_v2, %v3257_v29 }
 0xb0a   :  { %5255 = vtanh.f32 %v3259_v37 }
 0xb0c   :  { %v5254_v11 = vpop.eup %5253 }
 0xb14   :  { %v5256_v12 = vpop.eup %5255 }
 0xb15   :  { %v3261_v14 = vmul.f32 %v5256_v12, %v5254_v11 }
 0xb17   :  { %4776 = vmatmul.mubr.msk.f32.vlgmr.msra.gmra.mrb[38].mxu1 %vm42_vm0, %v3261_v14  ;;  %3263 = vst.msk [vmem:[#allocation4] sm:$0x3] %vm3262_vm7, %v3261_v14 }
 0xb18   :  { %5094 = vmatpush3.bf16.msra.mxu1 %v6005_v40  ;;  %4797 = vmatprep.mubr.msk.f32.mxu1 %vm5316_vm5, %v5317_v17 }
 0xb19   :  { %5095 = vmatprep.subr.bf16.mxu1 %v5315_v7 }
 0xb1c   :  { %5097 = vmatpush3.bf16.msra.mxu1 %v6015_v10 }
 0xb1d   :  { %5104 = vmatprep.subr.bf16.mxu1 %v5315_v7 }
 0xbea   :  { %v3344_v21 = vpop.f32.mrb[38].mxu1 }
 0xbeb   :  { %v3345_v9 = vadd.f32 %v4115_v54, %v3344_v21  ;;  %v4777_v47 = vpop.f32.mrb[39].mxu1 }
 0xbed   :  { %v3422_v49 = vadd.f32 %v3418_v57, %v3345_v9 }
 0xbef   :  { %v3423_v50 = vmax.f32 %v3422_v49, 0.0 }
 0xbf1   :  { %4798 = vmatmul.mubr.msk.f32.vlgmr.msra.gmra.mrb[40].mxu1 %vm42_vm0, %v3423_v50  ;;  %v3821_v62 = vrot.slane %v3423_v50, 1 }
 0xbf2   :  { %5106 = vmatpush3.bf16.msra.mxu1 %v6005_v40  ;;  %4819 = vmatprep.mubr.msk.f32.mxu1 %vm5316_vm5, %v5317_v17 }
 0xbf3   :  { %5107 = vmatprep.subr.bf16.mxu1 %v5315_v7 }
 0xbf6   :  { %5109 = vmatpush3.bf16.msra.mxu1 %v6015_v10 }
 0xbf7   :  { %4832 = vmatprep.subr.mxu1 %v5317_v17 }
 0xcc4   :  { %v3493_v51 = vpop.f32.mrb[40].mxu1 }
 0xcc5   :  { %v3497_v52 = vadd.f32 %v3493_v51, %v3345_v9  ;;  %v4799_v53 = vpop.f32.mrb[41].mxu1 }
 0xcc7   :  { %v3498_v3 = vmax.f32 %v3497_v52, 0.0 }
 0xcc9   :  { %4809 = vmatmul.mubr.msk.f32.vlgmr.msra.gmra.mrb[40].mxu0 %vm42_vm0, %v3498_v3  ;;  %v3649_v42 = vrot.slane %v3498_v3, 7  ;;  %v3827_v24 = vsel %vm624_vm6, %v3821_v62, %v3498_v3 }
 0xcca   :  { %4823 = vmatpush3.xpose.msk.msra.mxu0 %vm42_vm0, %v5466_v60  ;;  %4824 = vmatprep.mubr.msk.f32.mxu0 %vm5316_vm5, %v5317_v17 }
 0xccb   :  { %4827 = vmatprep.subr.mxu0 %v5317_v17  ;;  %v3656_v19 = vsel %vm624_vm6, %v3423_v50, %v3649_v42 }
 0xd9c   :  { %v3568_v59 = vpop.f32.mrb[40].mxu0 }
 0xd9d   :  { %v3572_v7 = vadd.f32 %v3568_v59, %v3345_v9  ;;  %v4810_v23 = vpop.f32.mrb[41].mxu0 }
 0xd9f   :  { %v3573_v27 = vmax.f32 %v3572_v7, 0.0 }
 0xda1   :  { %v3651_v6 = vrot.slane %v3573_v27, 6  ;;  %v3823_v18 = vrot.slane %v3573_v27, 7  ;;  %4820 = vmatmul.mubr.msk.f32.vlgmr.msra.gmra.mrb[42].mxu1 %vm42_vm0, %v3573_v27 }
 0xda2   :  { %4833 = vmatpush3.xpose.msk.msra.mxu1 %vm42_vm0, %v5468_v61  ;;  %4834 = vmatprep.mubr.msk.f32.mxu1 %vm5316_vm5, %v5317_v17 }
 0xda3   :  { %v3658_v25 = vsel %vm3657_vm8, %v3656_v19, %v3651_v6  ;;  %v3828_v0 = vsel %vm3657_vm8, %v3827_v24, %v3823_v18 }
 0xe74   :  { %v3643_v8 = vpop.f32.mrb[42].mxu1 }
 0xe75   :  { %v3647_v22 = vadd.f32 %v3643_v8, %v3345_v9  ;;  %v4821_v40 = vpop.f32.mrb[43].mxu1 }
 0xe77   :  { %v3648_v38 = vmax.f32 %v3647_v22, 0.0 }
 0xe79   :  { %v3654_v41 = vrot.slane %v3648_v38, 5  ;;  %v3825_v39 = vrot.slane %v3648_v38, 6 }
 0xe7b   :  { %v3659_v10 = vsel %vm165_vm2, %v3658_v25, %v3654_v41  ;;  %v3829_v1 = vsel %vm165_vm2, %v3828_v0, %v3825_v39 }
 0xe7c   :  { %4825 = vmatmul.mubr.msk.f32.vlgmr.msra.gmra.mrb[42].mxu0 %vm42_vm0, %v3659_v10  ;;  %4835 = vmatmul.mubr.msk.f32.vlgmr.msra.gmra.mrb[44].mxu1 %vm42_vm0, %v3829_v1 }
 0xe7d   :  { %4828 = vmatpush3.msra.mxu0 %v5466_v60  ;;  %4829 = vmatprep.mubr.msk.f32.mxu0 %vm5316_vm5, %v5317_v17 }
 0xe7e   :  { %4837 = vmatprep.subr.mxu0 %v5317_v17 }
 0xf4f   :  { %v3729_v58 = vpop.f32.mrb[42].mxu0  ;;  %v3899_v26 = vpop.f32.mrb[44].mxu1 }
 0xf50   :  { %v4826_v44 = vpop.f32.mrb[43].mxu0  ;;  %v4836_v63 = vpop.f32.mrb[45].mxu1  ;;  %v3734_v45 = vsel %vm3733_vm9, %v3729_v58, -inf  ;;  %v3903_v30 = vsel %vm3733_vm9, %v3899_v26, -inf }
 0xf51   :  { %3735 = vmax.xlane.f32.xlu1 %v3734_v45  ;;  %3904 = vmax.xlane.f32.xlu0 %v3903_v30 }
 0xfde   :  { %v3736_v31 = vpop.xlane.xlu1 %3735  ;;  %v3905_v35 = vpop.xlane.xlu0 %3904 }
 0xfdf   :  { %v3737_v36 = vsub.f32 %v3729_v58, %v3736_v31  ;;  %v3906_v60 = vsub.f32 %v3899_v26, %v3905_v35 }
 0xfe1   :  { %v3738_v32 = vmul.f32 1.442695, %v3737_v36  ;;  %v3907_v46 = vmul.f32 1.442695, %v3906_v60 }
 0xfe3   :  { %5257 = vpow2.f32 %v3738_v32 }
 0xfe4   :  { %5259 = vpow2.f32 %v3907_v46 }
 0xfed   :  { %v5258_v33 = vpop.eup %5257 }
 0xfee   :  { %v3740_v43 = vsel %vm3733_vm9, %v5258_v33, 0.0  ;;  %v5260_v4 = vpop.eup %5259 }
 0xfef   :  { %3741 = vadd.xlane.f32.xlu1 %v3740_v43  ;;  %v3909_v5 = vsel %vm3733_vm9, %v5260_v4, 0.0 }
 0xff3   :  { %3910 = vadd.xlane.f32.xlu1 %v3909_v5 }
0x107c   :  { %v3742_v48 = vpop.xlane.xlu1 %3741 }
0x107d   :  { %5261 = vrcp.f32 %v3742_v48 }
0x1080   :  { %v3911_v28 = vpop.xlane.xlu1 %3910 }
0x1081   :  { %5263 = vrcp.f32 %v3911_v28 }
0x1087   :  { %v5262_v34 = vpop.eup %5261 }
0x1088   :  { %v3744_v15 = vmul.f32 %v5262_v34, %v5258_v33 }
0x108a   :  { %4830 = vmatmul.mubr.msk.f32.vlgmr.msra.gmra.mrb[44].mxu0 %vm3745_vm10, %v3744_v15 }
0x108b   :  { %v5264_v16 = vpop.eup %5263  ;;  %4838 = vmatpush3.msra.mxu0 %v5468_v61  ;;  %4839 = vmatprep.mubr.msk.f32.mxu0 %vm5316_vm5, %v5317_v17 }
0x108c   :  { %v3913_v55 = vmul.f32 %v5264_v16, %v5260_v4 }
0x108e   :  { %4840 = vmatmul.mubr.msk.f32.vlgmr.msra.gmra.mrb[46].mxu0 %vm3745_vm10, %v3913_v55 }
0x108f   :  { %5276 = shalt.err (!%p5273_p4)
}
0x1090   :  { %s5277_s23 = scalar_lea.hbm %s6112_s10, 32 }
0x1091   :  { %p5278_p5 = scmp.ne.s32.totalorder %s6112_s10, %s5277_s23  ;;  %p5281_p6 = scmp.lt.u32.totalorder %s5277_s23, %s6112_s10 }
0x1093   :  { %p5283_p7 = pnand %p5281_p6, %p5278_p5 }
0x1095   :  { %5286 = shalt.err (!%p5283_p7)
}
0x1096   :  { %4010 = dma.vmem_to_hbm [thread:$0]  %s4008_s20, 32, %s6112_s10, [#allocation5]   ;;  %vm3819_vm11 = vcmask 257024  }
0x1097   :  { %s5319_s2 = smov [#allocation2]  }
0x1098   :  { %s3994_s27 = sshll.u32 %s5319_s2, 4  ;;  %s3995_s27 = int_to_ptr.vmem [resolvable:$true] %s3994_s27 }
0x1099   :  { %s5287_s28 = scalar_lea.vmem %s3995_s27, 128  ;;  %p5292_p9 = scmp.lt.s32.totalorder %s3995_s27, %s3995_s27 }
0x109a   :  { %p5288_p8 = scmp.ne.s32.totalorder %s3995_s27, %s5287_s28  ;;  %p5293_p10 = scmp.lt.s32.totalorder %s5287_s28, %s5287_s28 }
0x109c   :  { %p5294_p11 = por %p5293_p10, %p5292_p9 }
0x109e   :  { %p5295_p12 = pnand %p5294_p11, %p5288_p8 }
0x115d   :  { %v3815_v61 = vpop.f32.mrb[44].mxu0 }
0x115e   :  { %3820 = vst.msk [vmem:[#allocation2] sm:$0xf] %vm3819_vm11, %v3815_v61  ;;  %v4831_v17 = vpop.f32.mrb[45].mxu0 }
0x1161   :  { %v3983_v56 = vpop.f32.mrb[46].mxu0 }
0x1162   :  { %3988 = vst.msk [vmem:[#allocation2 + $0x4] sm:$0xf] %vm3819_vm11, %v3983_v56  ;;  %v4841_v2 = vpop.f32.mrb[47].mxu0 }
0x1163   :  { %5298 = shalt.err (!%p5295_p12)
}
0x1164   :  { %s5299_s10 = scalar_lea.hbm %s6111_s9, 128 }
0x1165   :  { %p5300_p13 = scmp.ne.s32.totalorder %s6111_s9, %s5299_s10  ;;  %p5303_p0 = scmp.lt.u32.totalorder %s5299_s10, %s6111_s9 }
0x1167   :  { %p5305_p1 = pnand %p5303_p0, %p5300_p13 }
0x1169   :  { %5308 = shalt.err (!%p5305_p1)
}
0x116a   :  { %s5320_s3 = smov 64   ;;  %s5321_s15 = smov 4  }
0x116b   :  { %4000 = dma.vmem_to_hbm [thread:$0]  %s3995_s27, 128, %s6111_s9, [#allocation3], %s5320_s3, %s5320_s3, %s5321_s15  }
0x116c   :  { %5309 = dma.done.wait [#allocation3], 128  }
0x116d   :  { %5310 = vsyncadd [#allocation3], 4294967168 }
0x116e   :  { %5311 = dma.done.wait [#allocation5], 32  }
0x116f   :  { %5312 = vsyncadd [#allocation5], 4294967264 }
0x1170   :  { %4017 = vsyncpa [#allocation3], 1 }
0x1171   :  { %4018 = vsyncpa [#allocation5], 1 }

</bundles_post_ra>
